<compile_context>
chip_gen: v5e
topology: v5e:2x2
jax: 0.10.0
libtpu: 0.0.40
codegen_flags: <defaults>
</compile_context>

<pallas_src>
import jax
import jax.numpy as jnp
from jax.experimental import pallas as pl
from jax.experimental.pallas import tpu as pltpu

# ---- small, static problem configuration (mirrors P_Model.__init__ shapes) ----
N = 32          # hidden dimension (torch default 100, shrunk for the demo)
K = 2           # system.k (two observable rows x0, x1)
C_SYS = 2       # system.c
M_SYS = 2       # system.m
RANK = 1        # low-rank rank
COLS = 4        # number of stacked trajectory columns in the state
NUM_STEPS = 8   # num_steps of the rollout
DT = 0.1        # system.dt
G = 0.5         # g (scale of W_random)

NK = N + K                      # 34

# packed-parameter buffer layout (single input, big block sublane-aligned at 8)
ROW_SM = 0                      # rows [0,2):  B | C        (cols 0:4)
ROW_Z = 2                       # rows [2,4):  [Z  | 0]     (cols 0:NK)
ROW_BOTA = 4                    # rows [4,6):  [0  | A]     (cols 0:NK)
ROW_VT = 6                      # row  [6,7):  [V.T| 0]     (cols 0:NK)
ROW_BIG = 8                     # rows [8,40): [W | 0 | M | U]
PRM_ROWS = ROW_BIG + N          # 40
PRM_COLS = 40

OUT_COLS = NUM_STEPS * COLS     # 32 (all steps side by side along lanes)
OUT_ROWS = NK + 1               # 34 state rows + 1 con row = 35

_PREC = jax.lax.Precision.HIGHEST


def _mxu(a, b):
    # MXU matmul; HIGHEST kept on purpose (see header comment).
    return jnp.dot(a, b, preferred_element_type=jnp.float32, precision=_PREC)


def p_model_kernel(prm_ref, s0_ref, out_ref):
    """create_p_matrix_from_low_rank (permuted/aligned layout) + doubling rollout.

    out_ref layout (rows x lanes = 35 x NUM_STEPS*COLS):
      rows 0..N-1   : column block t holds h_t (pre-update hidden state)
      rows N..N+1   : column block t holds x0_t, x1_t
      row  N+K      : column block t holds P[1:2, 2:] @ state_t[2:]
    """
    prm = prm_ref[...]                                       # (40, 40)

    B = prm[ROW_SM:ROW_SM + K, 0:M_SYS]                      # (K, M_SYS)
    Cm = prm[ROW_SM:ROW_SM + C_SYS, M_SYS:M_SYS + K]         # (C_SYS, K)
    Zext = prm[ROW_Z:ROW_Z + M_SYS, 0:NK]                    # [Z   | 0]   (M_SYS, NK)
    botA = prm[ROW_BOTA:ROW_BOTA + K, 0:NK]                  # [0   | A]   (K, NK)
    Vt = prm[ROW_VT:ROW_VT + 1, 0:NK]                        # [V.T | 0]   (1, NK)
    W = prm[ROW_BIG:ROW_BIG + N, 0:NK]                       # [W   | 0]   (N, NK)
    M = prm[ROW_BIG:ROW_BIG + N, NK:NK + C_SYS]              # (N, C_SYS)
    U = prm[ROW_BIG:ROW_BIG + N, NK + C_SYS:NK + C_SYS + RANK]  # (N, RANK)

    # ---- P build in the permuted/aligned layout [[P22, P21], [P12, P11]] ----
    # All K/RANK contractions on the VPU (exact f32); nothing touches the MXU.
    bz = B[:, 0:1] * Zext[0:1, :] + B[:, 1:2] * Zext[1:2, :]     # [B@Z | 0]     (K, NK)
    bottom = bz + botA                                           # [P12 | P11]   (K, NK)
    Gx = bz + DT * botA                                          # [B@Z | dt*A]  (K, NK)
    MC = M[:, 0:1] * Cm[0:1, :] + M[:, 1:2] * Cm[1:2, :]         # M @ C         (N, K)

    r_i = jax.lax.broadcasted_iota(jnp.int32, (N, NK), 0)
    c_i = jax.lax.broadcasted_iota(jnp.int32, (N, NK), 1)
    eye = (r_i == c_i).astype(jnp.float32)                       # [I_N | 0]     (N, NK)

    # [P22 | P21] = M@C @ [B@Z | dt*A] + (1-dt)*[I|0] + dt*([U@V.T|0] + [W|0])
    top = (MC[:, 0:1] * Gx[0:1, :] + MC[:, 1:2] * Gx[1:2, :]
           + (1.0 - DT) * eye + DT * (U * Vt + W))               # (N, NK)

    # single sublane concat at the aligned offset N=32
    Pm = jnp.concatenate([top, bottom], axis=0)                  # (NK, NK)

    # ---- rollout: repeated squaring with periodic-extension state register ----
    # Invariant: column block j of R holds s_{j mod m}; Q = P^m.  Fully unrolled.
    R = s0_ref[...]                                              # every block = s_0
    lane = jax.lax.broadcasted_iota(jnp.int32, (NK, OUT_COLS), 1)
    Q = Pm
    m = 1
    while m < NUM_STEPS:
        nxt = _mxu(Q, R)                                         # block j -> s_{(j mod m)+m}
        period = 2 * m * COLS
        if period & (period - 1) == 0:                           # power of two -> bit mask
            phase = lane & (period - 1)
        else:
            phase = lane % period
        keep = phase < (m * COLS)
        R = jnp.where(keep, R, nxt)                              # VPU select, stays in vregs
        m *= 2
        if m < NUM_STEPS:
            Q = _mxu(Q, Q)                                       # Q <- Q @ Q (full fused)

    # con_t = P[1:2, 2:] @ h_t for every step, one batched matmul.
    # bz row 1 is [P12[1,:] | 0], so the x-rows of R contribute exactly zero.
    con = _mxu(bz[K - 1:K, :], R)                                # (1, OUT_COLS)

    # exactly two stores, both full-width in lanes relative to out_ref
    out_ref[0:NK, :] = R
    out_ref[NK:NK + 1, :] = con


def p_model_forward(A, B, C, Mp, Z, U, V, W, x0, x1, h0):
    f32 = jnp.float32

    def padw(x):
        return jnp.pad(x.astype(f32), ((0, 0), (0, PRM_COLS - x.shape[1])))

    # --- pack all parameters into one sublane/lane-aligned buffer (1 DMA) ---
    small = padw(jnp.concatenate([B, C], axis=1))                          # rows 0-1
    zext = padw(Z)                                                         # rows 2-3
    bota = padw(jnp.concatenate([jnp.zeros((K, N), f32), A], axis=1))      # rows 4-5
    vt = padw(V.T)                                                         # row 6
    gap = jnp.zeros((ROW_BIG - (ROW_VT + 1), PRM_COLS), f32)               # row 7
    big = padw(jnp.concatenate([W, jnp.zeros((N, NK - N), f32), Mp, U], axis=1))
    params = jnp.concatenate([small, zext, bota, vt, gap, big], axis=0)    # (40, 40)

    # --- state permuted to aligned order [h; x0; x1], tiled over all step blocks ---
    s0 = jnp.concatenate([h0, x0, x1], axis=0).astype(f32)                 # (NK, COLS)
    s0_tiled = jnp.tile(s0, (1, NUM_STEPS))                                # (NK, OUT_COLS)

    out = pl.pallas_call(
        p_model_kernel,
        out_shape=jax.ShapeDtypeStruct((OUT_ROWS, OUT_COLS), jnp.float32),
        in_specs=[pl.BlockSpec(memory_space=pltpu.MemorySpace.VMEM)] * 2,
        out_specs=pl.BlockSpec(memory_space=pltpu.MemorySpace.VMEM),
    )(params, s0_tiled)

    # Unpack back to the PyTorch shapes / row order ([x0; x1; h] per step).
    h = out[0:N, :].reshape(N, NUM_STEPS, COLS)
    x = out[N:NK, :].reshape(K, NUM_STEPS, COLS)
    con = out[NK:OUT_ROWS, :].reshape(1, NUM_STEPS, COLS)
    traj = jnp.concatenate([x, h], axis=0).transpose(1, 0, 2)              # (T, N+K, COLS)
    all_con = con.transpose(1, 0, 2)                                       # (T, 1, COLS)
    return traj, all_con


def reference_forward(A, B, C, Mp, Z, U, V, W, x0, x1, h0):
    """Pure-JAX reference mirroring the PyTorch forward (teacher=None)."""
    with jax.default_matmul_precision("highest"):
        P11 = A
        P12 = B @ Z
        P21 = DT * (Mp @ C @ A)
        P22 = Mp @ C @ B @ Z + (1.0 - DT) * jnp.eye(N, dtype=jnp.float32) \
              + DT * (U @ V.T + W)
        top = jnp.concatenate([P11, P12], axis=1)
        bot = jnp.concatenate([P21, P22], axis=1)
        P = jnp.concatenate([top, bot], axis=0)

        state = jnp.concatenate([x0, x1, h0], axis=0)
        traj, con = [], []
        for _ in range(NUM_STEPS):
            traj.append(state)
            con.append(P[1:2, 2:] @ state[2:])
            state = P @ state
    return jnp.stack(traj), jnp.stack(con)


if __name__ == "__main__":
    key = jax.random.PRNGKey(0)
    ks = jax.random.split(key, 11)
    inv_sqrt_n = 1.0 / float(jnp.sqrt(N))

    # system matrices (deterministic synthetic init)
    A = 0.3 * jax.random.normal(ks[0], (K, K), jnp.float32)            # system.A
    B = 0.3 * jax.random.normal(ks[1], (K, M_SYS), jnp.float32)        # system.B
    C = 0.3 * jax.random.normal(ks[2], (C_SYS, K), jnp.float32)        # system.C

    # P_Model parameters (same distributions as __init__)
    Mp = jax.random.uniform(ks[3], (N, C_SYS), jnp.float32,
                            -inv_sqrt_n, inv_sqrt_n)                   # self.M
    Z = jax.random.uniform(ks[4], (M_SYS, N), jnp.float32,
                           -inv_sqrt_n, inv_sqrt_n)                    # self.Z
    U = inv_sqrt_n * jax.random.normal(ks[5], (N, RANK), jnp.float32)  # self.U
    V = inv_sqrt_n * jax.random.normal(ks[6], (N, RANK), jnp.float32)  # self.V
    W = G * inv_sqrt_n * jax.random.normal(ks[7], (N, N), jnp.float32) # self.W_random

    # forward inputs
    x0 = jax.random.normal(ks[8], (1, COLS), jnp.float32)
    x1 = jax.random.normal(ks[9], (1, COLS), jnp.float32)
    h0 = 0.1 * jax.random.normal(ks[10], (N, COLS), jnp.float32)

    traj, all_con = p_model_forward(A, B, C, Mp, Z, U, V, W, x0, x1, h0)
    traj = jax.block_until_ready(traj)
    all_con = jax.block_until_ready(all_con)

    traj_ref, con_ref = reference_forward(A, B, C, Mp, Z, U, V, W, x0, x1, h0)

    assert traj.shape == (NUM_STEPS, N + K, COLS)
    assert all_con.shape == (NUM_STEPS, 1, COLS)
    assert jnp.allclose(traj, traj_ref, rtol=1e-3, atol=1e-3)
    assert jnp.allclose(all_con, con_ref, rtol=1e-3, atol=1e-3)

    print("KERNEL_OK")
</pallas_src>

<mosaic_0001>
module attributes {stable_mosaic.version = 11 : i64} {
  func.func @p_model_kernel(%arg0: memref<40x40xf32, #tpu.memory_space<vmem>>, %arg1: memref<34x32xf32, #tpu.memory_space<vmem>>, %arg2: memref<35x32xf32, #tpu.memory_space<vmem>>) attributes {dimension_semantics = [], scalar_prefetch = 0 : i64, scratch_operands = 0 : i64, tpu.core_type = #tpu.core_type<tc>} {
    %c0 = arith.constant 0 : index
    %c0_0 = arith.constant 0 : index
    %0 = vector.load %arg0[%c0, %c0_0] : memref<40x40xf32, #tpu.memory_space<vmem>>, vector<40x40xf32>
    %1 = vector.extract_strided_slice %0 {offsets = [0, 0], sizes = [2, 2], strides = [1, 1]} : vector<40x40xf32> to vector<2x2xf32>
    %2 = vector.extract_strided_slice %0 {offsets = [0, 2], sizes = [2, 2], strides = [1, 1]} : vector<40x40xf32> to vector<2x2xf32>
    %3 = vector.extract_strided_slice %0 {offsets = [2, 0], sizes = [2, 34], strides = [1, 1]} : vector<40x40xf32> to vector<2x34xf32>
    %4 = vector.extract_strided_slice %0 {offsets = [4, 0], sizes = [2, 34], strides = [1, 1]} : vector<40x40xf32> to vector<2x34xf32>
    %5 = vector.extract_strided_slice %0 {offsets = [6, 0], sizes = [1, 34], strides = [1, 1]} : vector<40x40xf32> to vector<1x34xf32>
    %6 = vector.extract_strided_slice %0 {offsets = [8, 0], sizes = [32, 34], strides = [1, 1]} : vector<40x40xf32> to vector<32x34xf32>
    %7 = vector.extract_strided_slice %0 {offsets = [8, 34], sizes = [32, 2], strides = [1, 1]} : vector<40x40xf32> to vector<32x2xf32>
    %8 = vector.extract_strided_slice %0 {offsets = [8, 36], sizes = [32, 1], strides = [1, 1]} : vector<40x40xf32> to vector<32x1xf32>
    %9 = vector.extract_strided_slice %1 {offsets = [0, 0], sizes = [2, 1], strides = [1, 1]} : vector<2x2xf32> to vector<2x1xf32>
    %10 = vector.extract_strided_slice %3 {offsets = [0, 0], sizes = [1, 34], strides = [1, 1]} : vector<2x34xf32> to vector<1x34xf32>
    %11 = vector.broadcast %9 : vector<2x1xf32> to vector<2x34xf32>
    %12 = vector.broadcast %10 : vector<1x34xf32> to vector<2x34xf32>
    %13 = arith.mulf %11, %12 : vector<2x34xf32>
    %14 = vector.extract_strided_slice %1 {offsets = [0, 1], sizes = [2, 1], strides = [1, 1]} : vector<2x2xf32> to vector<2x1xf32>
    %15 = vector.extract_strided_slice %3 {offsets = [1, 0], sizes = [1, 34], strides = [1, 1]} : vector<2x34xf32> to vector<1x34xf32>
    %16 = vector.broadcast %14 : vector<2x1xf32> to vector<2x34xf32>
    %17 = vector.broadcast %15 : vector<1x34xf32> to vector<2x34xf32>
    %18 = arith.mulf %16, %17 : vector<2x34xf32>
    %19 = arith.addf %13, %18 : vector<2x34xf32>
    %20 = arith.addf %19, %4 : vector<2x34xf32>
    %cst = arith.constant 1.000000e-01 : f32
    %21 = vector.broadcast %cst : f32 to vector<2x34xf32>
    %22 = arith.mulf %21, %4 : vector<2x34xf32>
    %23 = arith.addf %19, %22 : vector<2x34xf32>
    %24 = vector.extract_strided_slice %7 {offsets = [0, 0], sizes = [32, 1], strides = [1, 1]} : vector<32x2xf32> to vector<32x1xf32>
    %25 = vector.extract_strided_slice %2 {offsets = [0, 0], sizes = [1, 2], strides = [1, 1]} : vector<2x2xf32> to vector<1x2xf32>
    %26 = vector.broadcast %24 : vector<32x1xf32> to vector<32x2xf32>
    %27 = vector.broadcast %25 : vector<1x2xf32> to vector<32x2xf32>
    %28 = arith.mulf %26, %27 : vector<32x2xf32>
    %29 = vector.extract_strided_slice %7 {offsets = [0, 1], sizes = [32, 1], strides = [1, 1]} : vector<32x2xf32> to vector<32x1xf32>
    %30 = vector.extract_strided_slice %2 {offsets = [1, 0], sizes = [1, 2], strides = [1, 1]} : vector<2x2xf32> to vector<1x2xf32>
    %31 = vector.broadcast %29 : vector<32x1xf32> to vector<32x2xf32>
    %32 = vector.broadcast %30 : vector<1x2xf32> to vector<32x2xf32>
    %33 = arith.mulf %31, %32 : vector<32x2xf32>
    %34 = arith.addf %28, %33 : vector<32x2xf32>
    %35 = tpu.iota {dimensions = array<i32: 0>} : vector<32x34xi32>
    %36 = tpu.iota {dimensions = array<i32: 1>} : vector<32x34xi32>
    %37 = arith.cmpi eq, %35, %36 : vector<32x34xi32>
    %38 = arith.extui %37 : vector<32x34xi1> to vector<32x34xi32>
    %39 = arith.sitofp %38 : vector<32x34xi32> to vector<32x34xf32>
    %40 = vector.extract_strided_slice %34 {offsets = [0, 0], sizes = [32, 1], strides = [1, 1]} : vector<32x2xf32> to vector<32x1xf32>
    %41 = vector.extract_strided_slice %23 {offsets = [0, 0], sizes = [1, 34], strides = [1, 1]} : vector<2x34xf32> to vector<1x34xf32>
    %42 = vector.broadcast %40 : vector<32x1xf32> to vector<32x34xf32>
    %43 = vector.broadcast %41 : vector<1x34xf32> to vector<32x34xf32>
    %44 = arith.mulf %42, %43 : vector<32x34xf32>
    %45 = vector.extract_strided_slice %34 {offsets = [0, 1], sizes = [32, 1], strides = [1, 1]} : vector<32x2xf32> to vector<32x1xf32>
    %46 = vector.extract_strided_slice %23 {offsets = [1, 0], sizes = [1, 34], strides = [1, 1]} : vector<2x34xf32> to vector<1x34xf32>
    %47 = vector.broadcast %45 : vector<32x1xf32> to vector<32x34xf32>
    %48 = vector.broadcast %46 : vector<1x34xf32> to vector<32x34xf32>
    %49 = arith.mulf %47, %48 : vector<32x34xf32>
    %50 = arith.addf %44, %49 : vector<32x34xf32>
    %cst_1 = arith.constant 0.899999976 : f32
    %51 = vector.broadcast %cst_1 : f32 to vector<32x34xf32>
    %52 = arith.mulf %51, %39 : vector<32x34xf32>
    %53 = arith.addf %50, %52 : vector<32x34xf32>
    %54 = vector.broadcast %8 : vector<32x1xf32> to vector<32x34xf32>
    %55 = vector.broadcast %5 : vector<1x34xf32> to vector<32x34xf32>
    %56 = arith.mulf %54, %55 : vector<32x34xf32>
    %57 = arith.addf %56, %6 : vector<32x34xf32>
    %cst_2 = arith.constant 1.000000e-01 : f32
    %58 = vector.broadcast %cst_2 : f32 to vector<32x34xf32>
    %59 = arith.mulf %58, %57 : vector<32x34xf32>
    %60 = arith.addf %53, %59 : vector<32x34xf32>
    %61 = tpu.concatenate %60, %20 in 0 : vector<32x34xf32>, vector<2x34xf32> -> vector<34x34xf32>
    %c0_3 = arith.constant 0 : index
    %c0_4 = arith.constant 0 : index
    %62 = vector.load %arg1[%c0_3, %c0_4] : memref<34x32xf32, #tpu.memory_space<vmem>>, vector<34x32xf32>
    %63 = tpu.iota {dimensions = array<i32: 1>} : vector<34x32xi32>
    %cst_5 = arith.constant dense<0.000000e+00> : vector<34x32xf32>
    %64 = tpu.matmul %61, %62, %cst_5 {dimension_numbers = #tpu.dot_dimension_numbers<[1], [0], [0], [1], [0, 0, 1, 1], [], []>, precision = #tpu.contract_precision<fp32>} : vector<34x34xf32>, vector<34x32xf32>, vector<34x32xf32> -> vector<34x32xf32>
    %c7_i32 = arith.constant 7 : i32
    %65 = vector.broadcast %c7_i32 : i32 to vector<34x32xi32>
    %66 = arith.andi %63, %65 : vector<34x32xi32>
    %c4_i32 = arith.constant 4 : i32
    %67 = vector.broadcast %c4_i32 : i32 to vector<34x32xi32>
    %68 = arith.cmpi slt, %66, %67 : vector<34x32xi32>
    %69 = arith.select %68, %62, %64 : vector<34x32xi1>, vector<34x32xf32>
    %cst_6 = arith.constant dense<0.000000e+00> : vector<34x34xf32>
    %70 = tpu.matmul %61, %61, %cst_6 {dimension_numbers = #tpu.dot_dimension_numbers<[1], [0], [0], [1], [0, 0, 1, 1], [], []>, precision = #tpu.contract_precision<fp32>} : vector<34x34xf32>, vector<34x34xf32>, vector<34x34xf32> -> vector<34x34xf32>
    %cst_7 = arith.constant dense<0.000000e+00> : vector<34x32xf32>
    %71 = tpu.matmul %70, %69, %cst_7 {dimension_numbers = #tpu.dot_dimension_numbers<[1], [0], [0], [1], [0, 0, 1, 1], [], []>, precision = #tpu.contract_precision<fp32>} : vector<34x34xf32>, vector<34x32xf32>, vector<34x32xf32> -> vector<34x32xf32>
    %c15_i32 = arith.constant 15 : i32
    %72 = vector.broadcast %c15_i32 : i32 to vector<34x32xi32>
    %73 = arith.andi %63, %72 : vector<34x32xi32>
    %c8_i32 = arith.constant 8 : i32
    %74 = vector.broadcast %c8_i32 : i32 to vector<34x32xi32>
    %75 = arith.cmpi slt, %73, %74 : vector<34x32xi32>
    %76 = arith.select %75, %69, %71 : vector<34x32xi1>, vector<34x32xf32>
    %cst_8 = arith.constant dense<0.000000e+00> : vector<34x34xf32>
    %77 = tpu.matmul %70, %70, %cst_8 {dimension_numbers = #tpu.dot_dimension_numbers<[1], [0], [0], [1], [0, 0, 1, 1], [], []>, precision = #tpu.contract_precision<fp32>} : vector<34x34xf32>, vector<34x34xf32>, vector<34x34xf32> -> vector<34x34xf32>
    %cst_9 = arith.constant dense<0.000000e+00> : vector<34x32xf32>
    %78 = tpu.matmul %77, %76, %cst_9 {dimension_numbers = #tpu.dot_dimension_numbers<[1], [0], [0], [1], [0, 0, 1, 1], [], []>, precision = #tpu.contract_precision<fp32>} : vector<34x34xf32>, vector<34x32xf32>, vector<34x32xf32> -> vector<34x32xf32>
    %c31_i32 = arith.constant 31 : i32
    %79 = vector.broadcast %c31_i32 : i32 to vector<34x32xi32>
    %80 = arith.andi %63, %79 : vector<34x32xi32>
    %c16_i32 = arith.constant 16 : i32
    %81 = vector.broadcast %c16_i32 : i32 to vector<34x32xi32>
    %82 = arith.cmpi slt, %80, %81 : vector<34x32xi32>
    %83 = arith.select %82, %76, %78 : vector<34x32xi1>, vector<34x32xf32>
    %84 = vector.extract_strided_slice %19 {offsets = [1, 0], sizes = [1, 34], strides = [1, 1]} : vector<2x34xf32> to vector<1x34xf32>
    %cst_10 = arith.constant dense<0.000000e+00> : vector<1x32xf32>
    %85 = tpu.matmul %84, %83, %cst_10 {dimension_numbers = #tpu.dot_dimension_numbers<[1], [0], [0], [1], [0, 0, 1, 1], [], []>, precision = #tpu.contract_precision<fp32>} : vector<1x34xf32>, vector<34x32xf32>, vector<1x32xf32> -> vector<1x32xf32>
    %c0_11 = arith.constant 0 : index
    %c0_12 = arith.constant 0 : index
    %86 = vector.load %arg2[%c0_11, %c0_12] : memref<35x32xf32, #tpu.memory_space<vmem>>, vector<34x32xf32>
    tpu.vector_store %arg2[%c0_11, %c0_12], %83 {strides = array<i32>} : memref<35x32xf32, #tpu.memory_space<vmem>>, vector<34x32xf32>,
    %c34 = arith.constant 34 : index
    %c0_13 = arith.constant 0 : index
    %87 = vector.load %arg2[%c34, %c0_13] : memref<35x32xf32, #tpu.memory_space<vmem>>, vector<1x32xf32>
    tpu.vector_store %arg2[%c34, %c0_13], %85 {strides = array<i32>} : memref<35x32xf32, #tpu.memory_space<vmem>>, vector<1x32xf32>,
    return
  }
}

</mosaic_0001>

<bundles_post_ra>
// kernel: tpu_custom_call.1
= control target key start
LH: loop header
LB: loop body
LE: loop exit
PB: predicated region body
PF: predicated region fallthrough
CT: control target
= control target key end

     0   :  { %v2142_v0 = vmov 34   ;;  %v2143_v4 = vmov 35   ;;  %v2144_v7 = vmov 0   ;;  %v2145_v8 = vmov 1   ;;  %s2871_s0 = inlined_call_operand.vmem [shape: f32[40,40], index: 0, kind: input, shape index: {}]   ;;  %s2872_s1 = inlined_call_operand.vmem [shape: f32[34,32], index: 1, kind: input, shape index: {}]   ;;  %s2873_s2 = inlined_call_operand.vmem [shape: f32[35,32], index: 2, kind: output, shape index: {}]  }
   0x1   :  { %2126 = vset.pattern.permute.xlu1 %v2142_v0  ;;  %2124 = vset.pattern.permute.xlu0 %v2142_v0  ;;  %v2168_v1 = vld [vmem:[%s2871_s0 + $0x10] sm:$0xff]  ;;  %v2173_v2 = vld [vmem:[%s2871_s0 + $0x8] sm:$0xff]  ;;  %v2180_v3 = vld [vmem:[%s2871_s0 + $0x18] sm:$0xff]  ;;  %v2146_v9 = vmov 36   ;;  %v2147_v10 = vmov 2   ;;  %v2148_v11 = vmov 3  }
   0x2   :  { %45 = vperm.xlu1 %2126, %v2168_v1   ;;  %40 = vperm.xlu0 %2124, %v2173_v2   ;;  %v2189_v5 = vld [vmem:[%s2871_s0] sm:$0xff]  ;;  %vm219_vm0 = vcmask 1041408   ;;  %v2219_v44 = vld [vmem:[%s2872_s1 + $0x18] sm:$0xff]  ;;  %v2227_v48 = vld [vmem:[%s2872_s1 + $0x10] sm:$0xff]  ;;  %vm203_vm3 = vcmask 277504   ;;  %vm2099_vm9 = vcmask 261120  }
   0x3   :  { %2128 = vset.pattern.permute.xlu2 %v2142_v0  ;;  %v2194_v6 = vld [vmem:[%s2871_s0 + $0x20] sm:$0xff]  ;;  %v58_v14 = vperm.slane %v2189_v5, 0  ;;  %v79_v15 = vperm.slane %v2189_v5, 1  ;;  %v27_v34 = vperm.slane %v2189_v5, 3  ;;  %v21_v35 = vperm.slane %v2189_v5, 2  ;;  %v2237_v53 = vld [vmem:[%s2872_s1 + $0x8] sm:$0xff] }
   0x4   :  { %50 = vperm.xlu2 %2128, %v2180_v3   ;;  %v2211_v38 = vld [vmem:[%s2872_s1 + $0x20] sm:$0x3]  ;;  %v30_v43 = vrot.slane %v2189_v5, 4  ;;  %v236_v46 = vand.u32 4294901760, %v2219_v44  ;;  %v238_v51 = vand.u32 4294901760, %v2227_v48  ;;  %v240_v57 = vand.u32 4294901760, %v2237_v53 }
   0x5   :  { %v221_v41 = vsel %vm219_vm0, %v2211_v38, 0  ;;  %v2244_v58 = vld [vmem:[%s2872_s1] sm:$0xff]  ;;  %vm2104_vm10 = vcmask 254976   ;;  %vm2106_vm11 = vcmask 253952  }
   0x6   :  { %v234_v42 = vand.u32 4294901760, %v221_v41  ;;  %v303_v50 = vsub.f32 %v2219_v44, %v236_v46  ;;  %v309_v56 = vsub.f32 %v2227_v48, %v238_v51  ;;  %v315_v62 = vsub.f32 %v2237_v53, %v240_v57 }
   0x7   :  { %v242_v63 = vand.u32 4294901760, %v2244_v58 }
   0x8   :  { %v297_v45 = vsub.f32 %v221_v41, %v234_v42  ;;  %411 = vmatpush.msra.mxu3 %v234_v42  ;;  %235 = vmatpush.msra.mxu0 %v234_v42  ;;  %v304_v55 = vand.u32 4294901760, %v303_v50  ;;  %v310_v61 = vand.u32 4294901760, %v309_v56 }
   0xa   :  { %2127 = vset.pattern.permute.xlu1 %v2143_v4  ;;  %2125 = vset.pattern.permute.xlu0 %v2143_v4  ;;  %v298_v49 = vand.u32 4294901760, %v297_v45  ;;  %v305_v60 = vsub.f32 %v303_v50, %v304_v55 }
   0xb   :  { %68 = vperm.xlu1 %2127, %v2168_v1   ;;  %64 = vperm.xlu0 %2125, %v2173_v2  }
   0xc   :  { %2129 = vset.pattern.permute.xlu2 %v2143_v4  ;;  %360 = vmatpush.msra.mxu2 %v297_v45  ;;  %v299_v54 = vsub.f32 %v297_v45, %v298_v49  ;;  %v311_v4 = vsub.f32 %v309_v56, %v310_v61 }
   0xd   :  { %72 = vperm.xlu2 %2129, %v2180_v3   ;;  %413 = vmatpush.msra.mxu3 %v236_v46 }
   0xe   :  { %237 = vmatpush.msra.mxu0 %v236_v46  ;;  %363 = vmatpush.msra.mxu2 %v303_v50  ;;  %v300_v59 = vand.u32 4294901760, %v299_v54 }
   0xf   :  { %415 = vmatpush.msra.mxu3 %v238_v51 }
  0x10   :  { %239 = vmatpush.msra.mxu0 %v238_v51  ;;  %366 = vmatpush.msra.mxu2 %v309_v56 }
  0x11   :  { %417 = vmatpush.msra.mxu3 %v240_v57  ;;  %301 = vmatpush.msra.mxu1 %v300_v59 }
  0x12   :  { %241 = vmatpush.msra.mxu0 %v240_v57  ;;  %369 = vmatpush.msra.mxu2 %v315_v62 }
  0x13   :  { %2130 = vset.pattern.permute.xlu1 %v2142_v0  ;;  %2131 = vset.pattern.permute.xlu0 %v2144_v7  ;;  %v306_v0 = vand.u32 4294901760, %v305_v60  ;;  %v316_v7 = vand.u32 4294901760, %v315_v62 }
  0x14   :  { %55 = vperm.xlu1 %2130, %v2194_v6   ;;  %18 = vperm.xlu0 %2131, %v2189_v5  }
  0x15   :  { %76 = vperm.xlu2 %2129, %v2194_v6   ;;  %419 = vmatpush.msra.mxu3 %v242_v63 }
  0x16   :  { %243 = vmatpush.msra.mxu0 %v242_v63  ;;  %307 = vmatpush.msra.mxu1 %v306_v0 }
  0x18   :  { %465 = vmatpush.msrb.mxu0 %v298_v49 }
  0x1a   :  { %469 = vmatpush.msrb.mxu0 %v304_v55 }
  0x1c   :  { %2132 = vset.pattern.permute.xlu1 %v2145_v8  ;;  %2137 = vset.pattern.permute.xlu0 %v2147_v10 }
  0x1d   :  { %24 = vperm.xlu1 %2132, %v2189_v5   ;;  %2133 = vset.pattern.permute.xlu2 %v2146_v9 }
  0x1e   :  { %166 = vperm.xlu2 %2133, %v2173_v2   ;;  %473 = vmatpush.msrb.mxu0 %v310_v61 }
  0x20   :  { %477 = vmatpush.msrb.mxu0 %v316_v7 }
  0x25   :  { %2136 = vset.pattern.permute.xlu1 %v2148_v11 }
  0x26   :  { %2134 = vset.pattern.permute.xlu2 %v2147_v10 }
  0x5e   :  { %v51_v20 = vpop.permute.xlu2 %50 }
  0x5f   :  { %v61_v26 = vmul.f32 %v58_v14, %v51_v20 }
  0x67   :  { %v73_v25 = vpop.permute.xlu2 %72 }
  0x68   :  { %v82_v27 = vmul.f32 %v79_v15, %v73_v25  ;;  %v2263_v25 = vperm.slane %v2189_v5, 6 }
  0x6a   :  { %v86_v28 = vadd.f32 %v82_v27, %v61_v26 }
  0x6f   :  { %v77_v29 = vpop.permute.xlu2 %76 }
  0x70   :  { %v83_v31 = vmul.f32 %v79_v15, %v77_v29 }
  0x74   :  { %v41_v12 = vpop.permute.xlu0 %40  ;;  %v46_v13 = vpop.permute.xlu1 %45 }
  0x75   :  { %v60_v16 = vmul.f32 %v58_v14, %v46_v13  ;;  %v59_v19 = vmul.f32 %v58_v14, %v41_v12  ;;  %v317_v12 = vsub.f32 %v315_v62, %v316_v7 }
  0x7d   :  { %v69_v17 = vpop.permute.xlu1 %68  ;;  %v65_v18 = vpop.permute.xlu0 %64 }
  0x7e   :  { %v81_v21 = vmul.f32 %v79_v15, %v69_v17  ;;  %v80_v22 = vmul.f32 %v79_v15, %v65_v18  ;;  %v318_v15 = vand.u32 4294901760, %v317_v12 }
  0x80   :  { %v85_v23 = vadd.f32 %v81_v21, %v60_v16  ;;  %v84_v24 = vadd.f32 %v80_v22, %v59_v19  ;;  %v167_v21 = vpop.permute.xlu2 %166  ;;  %v33_v22 = vmul.f32 0.1, %v2189_v5 }
  0x82   :  { %114 = vperm.xlu0 %2137, %v85_v23   ;;  %133 = vperm.xlu1 %2136, %v84_v24  }
  0x83   :  { %109 = vperm.xlu2 %2134, %v84_v24   ;;  %v35_v24 = vrot.slane %v33_v22, 4 }
  0x86   :  { %v56_v30 = vpop.permute.xlu1 %55  ;;  %v19_v37 = vpop.permute.xlu0 %18 }
  0x87   :  { %v62_v32 = vmul.f32 %v58_v14, %v56_v30  ;;  %v22_v40 = vmul.f32 %v21_v35, %v19_v37  ;;  %v182_v30 = vmul.f32 %v2263_v25, %v167_v21 }
  0x89   :  { %v87_v33 = vadd.f32 %v83_v31, %v62_v32  ;;  %v2149_v32 = vmov 0.0   ;;  %v186_v5 = vadd.f32 %v182_v30, %v2173_v2 }
  0x8a   :  { %137 = vperm.xlu1 %2136, %v85_v23   ;;  %2140 = vset.pattern.permute.xlu0 %v2146_v9  ;;  %v88_v23 = vlaneseq }
  0x8b   :  { %2135 = vset.pattern.permute.xlu2 %v2146_v9  ;;  %174 = vperm.xlu0 %2140, %v2180_v3  }
  0x8c   :  { %170 = vperm.xlu2 %2135, %v2168_v1   ;;  %v2265_v26 = vshrl.u32 %v88_v23, 7  ;;  %v2267_v27 = vand.u32 127, %v88_v23 }
  0x8e   :  { %vm95_vm1 = vcmp.eq.s32.totalorder %v2265_v26, %v2267_v27  ;;  %v90_v35 = vadd.s32 8, %v2265_v26  ;;  %v91_v54 = vadd.s32 16, %v2265_v26 }
  0x8f   :  { %v25_v36 = vpop.permute.xlu1 %24 }
  0x90   :  { %v28_v39 = vmul.f32 %v27_v34, %v25_v36  ;;  %vm96_vm2 = vcmp.eq.s32.totalorder %v90_v35, %v2267_v27  ;;  %vm97_vm4 = vcmp.eq.s32.totalorder %v91_v54, %v2267_v27  ;;  %v92_v35 = vadd.s32 24, %v2265_v26 }
  0x91   :  { %v2113_v2 = vsel %vm96_vm2, 1.0, %v2149_v32 }
  0x92   :  { %2138 = vset.pattern.permute.xlu1 %v2147_v10  ;;  %v2222_v47 = vadd.f32 %v28_v39, %v22_v40  ;;  %v158_v59 = vmul.f32 0.9, %v2113_v2  ;;  %vm98_vm5 = vcmp.eq.s32.totalorder %v92_v35, %v2267_v27 }
  0x93   :  { %119 = vperm.xlu1 %2138, %v86_v28  }
  0x94   :  { %2139 = vset.pattern.permute.xlu2 %v2148_v11  ;;  %v2232_v52 = vadd.f32 %v30_v43, %v2222_v47  ;;  %v312_v11 = vand.u32 4294901760, %v311_v4  ;;  %v190_v43 = vmul.f32 0.1, %v186_v5 }
  0x95   :  { %141 = vperm.xlu2 %2139, %v86_v28   ;;  %v37_v28 = vadd.f32 %v35_v24, %v2222_v47 }
  0x96   :  { %v552_v8 = vsel %vm219_vm0, %v2232_v52, 0  ;;  %313 = vmatpush.msra.mxu1 %v312_v11 }
  0x97   :  { %v2251_v10 = vand.u32 4294901760, %v552_v8  ;;  %v2273_v31 = vperm.slane %v37_v28, 0  ;;  %v2277_v34 = vperm.slane %v37_v28, 1 }
  0x98   :  { %319 = vmatpush.msra.mxu1 %v318_v15 }
  0x99   :  { %v2254_v14 = vsub.f32 %v552_v8, %v2251_v10 }
  0x9b   :  { %124 = vperm.xlu1 %2138, %v87_v33   ;;  %v629_v17 = vand.u32 4294901760, %v2254_v14 }
  0x9d   :  { %145 = vperm.xlu2 %2139, %v87_v33   ;;  %v630_v19 = vsub.f32 %v2254_v14, %v629_v17  ;;  %v2112_v33 = vsel %vm95_vm1, 1.0, %v2149_v32 }
  0x9e   :  { %v157_v40 = vmul.f32 0.9, %v2112_v33 }
  0x9f   :  { %v631_v20 = vand.u32 4294901760, %v630_v19 }
  0xa1   :  { %632 = vmatpush.msrb.mxu3 %v631_v20 }
  0xa3   :  { %2141 = vset.pattern.permute.xlu1 %v2146_v9  ;;  %v321_v9 = vsub.f32 %v2244_v58, %v242_v63 }
  0xa4   :  { %178 = vperm.xlu1 %2141, %v2194_v6  }
  0xa5   :  { %372 = vmatpush.msra.mxu2 %v321_v9  ;;  %v322_v13 = vand.u32 4294901760, %v321_v9 }
  0xa7   :  { %566 = vmatpush.msrb.mxu2 %v2251_v10  ;;  %v323_v16 = vsub.f32 %v321_v9, %v322_v13  ;;  %481 = vmatpush.msrb.mxu0 %v322_v13  ;;  %v2114_v9 = vsel %vm97_vm4, 1.0, %v2149_v32 }
  0xa9   :  { %v324_v18 = vand.u32 4294901760, %v323_v16 }
  0xab   :  { %325 = vmatpush.msra.mxu1 %v324_v18  ;;  %v159_v18 = vmul.f32 0.9, %v2114_v9 }
  0xad   :  { %515 = vmatpush.msrb.mxu1 %v234_v42 }
  0xaf   :  { %517 = vmatpush.msrb.mxu1 %v236_v46 }
  0xb1   :  { %519 = vmatpush.msrb.mxu1 %v238_v51 }
  0xb3   :  { %521 = vmatpush.msrb.mxu1 %v240_v57 }
  0xb5   :  { %523 = vmatpush.msrb.mxu1 %v242_v63 }
  0xdd   :  { %v110_v29 = vpop.permute.xlu2 %109 }
  0xde   :  { %v128_v37 = vmul.f32 %v2273_v31, %v110_v29 }
  0xe6   :  { %v171_v42 = vpop.permute.xlu2 %170 }
  0xe7   :  { %v183_v45 = vmul.f32 %v2263_v25, %v171_v42 }
  0xe9   :  { %v187_v50 = vadd.f32 %v183_v45, %v2168_v1  ;;  %v2115_v45 = vsel %vm98_vm5, 1.0, %v2149_v32 }
  0xeb   :  { %v191_v63 = vmul.f32 0.1, %v187_v50  ;;  %v160_v50 = vmul.f32 0.9, %v2115_v45 }
  0xef   :  { %v142_v11 = vpop.permute.xlu2 %141 }
  0xf0   :  { %v151_v20 = vmul.f32 %v2277_v34, %v142_v11 }
  0xf4   :  { %v134_v36 = vpop.permute.xlu1 %133  ;;  %v115_v39 = vpop.permute.xlu0 %114 }
  0xf5   :  { %v149_v41 = vmul.f32 %v2277_v34, %v134_v36  ;;  %v129_v56 = vmul.f32 %v2273_v31, %v115_v39 }
  0xf7   :  { %v153_v46 = vadd.f32 %v149_v41, %v128_v37  ;;  %v146_v42 = vpop.permute.xlu2 %145 }
  0xf9   :  { %v161_v49 = vadd.f32 %v157_v40, %v153_v46  ;;  %v152_v46 = vmul.f32 %v2277_v34, %v146_v42 }
  0xfb   :  { %v2286_v51 = vadd.f32 %v190_v43, %v161_v49 }
  0xfc   :  { %v138_v55 = vpop.permute.xlu1 %137 }
  0xfd   :  { %v205_v57 = vsel %vm203_vm3, %v2286_v51, 0  ;;  %v150_v60 = vmul.f32 %v2277_v34, %v138_v55  ;;  %v175_v61 = vpop.permute.xlu0 %174 }
  0xfe   :  { %v2293_v62 = vand.u32 4294901760, %v205_v57  ;;  %v184_v4 = vmul.f32 %v2263_v25, %v175_v61 }
  0xff   :  { %v154_v0 = vadd.f32 %v150_v60, %v129_v56  ;;  %v217_v60 = vsel %vm203_vm3, %v2232_v52, 0 }
 0x100   :  { %327 = vmatmul.f32.vlgmr.msra.gmra.mxu1 %v2293_v62  ;;  %v2298_v1 = vsub.f32 %v205_v57, %v2293_v62  ;;  %v188_v13 = vadd.f32 %v184_v4, %v2180_v3 }
 0x101   :  { %v162_v7 = vadd.f32 %v158_v59, %v154_v0  ;;  %742 = vmatpush.msra.mxu1 %v2251_v10 }
 0x102   :  { %375 = vmatmul.f32.vlgmr.msra.gmra.mxu2 %v2298_v1  ;;  %v2304_v8 = vand.u32 4294901760, %v2298_v1  ;;  %v192_v24 = vmul.f32 0.1, %v188_v13 }
 0x103   :  { %v195_v12 = vadd.f32 %v191_v63, %v162_v7  ;;  %v2370_v7 = vand.u32 4294901760, %v217_v60 }
 0x104   :  { %423 = vmatmul.f32.vlgmr.msra.gmra.mxu3 %v2304_v8  ;;  %v247_v15 = vsub.f32 %v2298_v1, %v2304_v8 }
 0x105   :  { %v208_v16 = vsel %vm203_vm3, %v195_v12, 0  ;;  %v120_v19 = vpop.permute.xlu1 %119  ;;  %v2360_v59 = vand.u32 4294901760, %v195_v12 }
 0x106   :  { %v2313_v21 = vand.u32 4294901760, %v208_v16  ;;  %v130_v22 = vmul.f32 %v2273_v31, %v120_v19  ;;  %v2316_v23 = vand.u32 4294901760, %v247_v15 }
 0x107   :  { %v646_v4 = vsub.f32 %v195_v12, %v2360_v59 }
 0x108   :  { %v155_v28 = vadd.f32 %v151_v20, %v130_v22  ;;  %249 = vmatmul.f32.vlgmr.msra.gmra.mxu0 %v2316_v23  ;;  %331 = vmatmul.f32.gmra.mxu1 %v2313_v21  ;;  %v2321_v3 = vsub.f32 %v208_v16, %v2313_v21 }
 0x109   :  { %691 = vmatpush.msra.mxu0 %v2254_v14  ;;  %v647_v16 = vand.u32 4294901760, %v646_v4 }
 0x10a   :  { %v163_v29 = vadd.f32 %v159_v18, %v155_v28  ;;  %380 = vmatmul.f32.gmra.mxu2 %v2321_v3  ;;  %v2326_v30 = vand.u32 4294901760, %v2321_v3 }
 0x10c   :  { %v196_v33 = vadd.f32 %v192_v24, %v163_v29  ;;  %429 = vmatmul.f32.gmra.mxu3 %v2326_v30  ;;  %v255_v5 = vsub.f32 %v2321_v3, %v2326_v30  ;;  %v648_v29 = vsub.f32 %v646_v4, %v647_v16 }
 0x10d   :  { %v125_v36 = vpop.permute.xlu1 %124 }
 0x10e   :  { %v211_v37 = vsel %vm203_vm3, %v196_v33, 0  ;;  %v2333_v39 = vand.u32 4294901760, %v255_v5  ;;  %v131_v43 = vmul.f32 %v2273_v31, %v125_v36  ;;  %v2358_v57 = vand.u32 4294901760, %v196_v33 }
 0x10f   :  { %v2335_v40 = vand.u32 4294901760, %v211_v37 }
 0x110   :  { %257 = vmatmul.f32.gmra.mxu0 %v2333_v39  ;;  %v156_v54 = vadd.f32 %v152_v46, %v131_v43  ;;  %v640_v63 = vsub.f32 %v196_v33, %v2358_v57 }
 0x111   :  { %335 = vmatmul.f32.gmra.mxu1 %v2335_v40  ;;  %v2341_v41 = vsub.f32 %v211_v37, %v2335_v40  ;;  %v649_v37 = vand.u32 4294901760, %v648_v29 }
 0x112   :  { %v164_v32 = vadd.f32 %v160_v50, %v156_v54  ;;  %v641_v13 = vand.u32 4294901760, %v640_v63 }
 0x113   :  { %385 = vmatmul.f32.gmra.mxu2 %v2341_v41  ;;  %v2346_v26 = vand.u32 4294901760, %v2341_v41 }
 0x114   :  { %v642_v20 = vsub.f32 %v640_v63, %v641_v13 }
 0x115   :  { %435 = vmatmul.f32.gmra.mxu3 %v2346_v26  ;;  %v263_v49 = vsub.f32 %v2341_v41, %v2346_v26 }
 0x116   :  { %v179_v2 = vpop.permute.xlu1 %178  ;;  %v643_v35 = vand.u32 4294901760, %v642_v20 }
 0x117   :  { %v185_v55 = vmul.f32 %v2263_v25, %v179_v2  ;;  %v2354_v31 = vand.u32 4294901760, %v263_v49  ;;  %v2366_v25 = vand.u32 4294901760, %v2286_v51 }
 0x119   :  { %v189_v56 = vadd.f32 %v185_v55, %v2194_v6  ;;  %265 = vmatmul.f32.gmra.mxu0 %v2354_v31  ;;  %v652_v52 = vsub.f32 %v2286_v51, %v2366_v25  ;;  %v2387_v51 = vsub.f32 %v217_v60, %v2370_v7 }
 0x11b   :  { %v193_v34 = vmul.f32 0.1, %v189_v56  ;;  %v653_v22 = vand.u32 4294901760, %v652_v52  ;;  %v278_v5 = vand.u32 4294901760, %v2387_v51 }
 0x11d   :  { %v197_v61 = vadd.f32 %v193_v34, %v164_v32  ;;  %v654_v36 = vsub.f32 %v652_v52, %v653_v22  ;;  %v279_v42 = vsub.f32 %v2387_v51, %v278_v5 }
 0x11f   :  { %v214_v0 = vsel %vm203_vm3, %v197_v61, 0  ;;  %v567_v6 = vand.u32 4294901760, %v197_v61  ;;  %v655_v14 = vand.u32 4294901760, %v654_v36 }
 0x120   :  { %v2372_v9 = vand.u32 4294901760, %v214_v0 }
 0x121   :  { %568 = vmatpush.msrb.mxu2 %v567_v6  ;;  %744 = vmatpush.msra.mxu1 %v567_v6  ;;  %v634_v11 = vsub.f32 %v197_v61, %v567_v6 }
 0x122   :  { %339 = vmatmul.f32.gmra.mxu1 %v2372_v9  ;;  %v2378_v15 = vsub.f32 %v214_v0, %v2372_v9 }
 0x123   :  { %570 = vmatpush.msrb.mxu2 %v2358_v57  ;;  %694 = vmatpush.msra.mxu0 %v634_v11  ;;  %v635_v12 = vand.u32 4294901760, %v634_v11 }
 0x124   :  { %746 = vmatpush.msra.mxu1 %v2358_v57  ;;  %390 = vmatmul.f32.gmra.mxu2 %v2378_v15  ;;  %v2384_v18 = vand.u32 4294901760, %v2378_v15 }
 0x125   :  { %572 = vmatpush.msrb.mxu2 %v2360_v59  ;;  %697 = vmatpush.msra.mxu0 %v640_v63  ;;  %v636_v19 = vsub.f32 %v634_v11, %v635_v12 }
 0x126   :  { %748 = vmatpush.msra.mxu1 %v2360_v59  ;;  %441 = vmatmul.f32.gmra.mxu3 %v2384_v18  ;;  %v271_v24 = vsub.f32 %v2378_v15, %v2384_v18 }
 0x127   :  { %574 = vmatpush.msrb.mxu2 %v2366_v25  ;;  %700 = vmatpush.msra.mxu0 %v646_v4  ;;  %v637_v28 = vand.u32 4294901760, %v636_v19 }
 0x128   :  { %750 = vmatpush.msra.mxu1 %v2366_v25  ;;  %v272_v33 = vand.u32 4294901760, %v271_v24 }
 0x129   :  { %796 = vmatpush.msra.mxu2 %v629_v17  ;;  %638 = vmatpush.msrb.mxu3 %v637_v28  ;;  %v280_v17 = vand.u32 4294901760, %v279_v42 }
 0x12a   :  { %703 = vmatpush.msra.mxu0 %v652_v52  ;;  %343 = vmatmul.f32.gmra.mxu1 %v2370_v7 }
 0x12b   :  { %273 = vmatmul.f32.gmra.mxu0 %v272_v33  ;;  %800 = vmatpush.msra.mxu2 %v635_v12 }
 0x12c   :  { %644 = vmatpush.msrb.mxu3 %v643_v35  ;;  %395 = vmatmul.f32.gmra.mxu2 %v2387_v51 }
 0x12d   :  { %804 = vmatpush.msra.mxu2 %v641_v13 }
 0x12e   :  { %650 = vmatpush.msrb.mxu3 %v649_v37 }
 0x12f   :  { %447 = vmatmul.f32.gmra.mxu3 %v278_v5  ;;  %808 = vmatpush.msra.mxu2 %v647_v16 }
 0x130   :  { %656 = vmatpush.msrb.mxu3 %v655_v14 }
 0x131   :  { %812 = vmatpush.msra.mxu2 %v653_v22 }
 0x132   :  { %846 = vmatpush.msra.mxu3 %v2251_v10  ;;  %525 = vmatmul.f32.vlgmr.msrb.gmra.mxu1 %v2293_v62 }
 0x133   :  { %281 = vmatmul.f32.gmra.mxu0 %v280_v17 }
 0x134   :  { %848 = vmatpush.msra.mxu3 %v567_v6  ;;  %580 = vmatmul.f32.vlgmr.msrb.gmra.mxu2 %v2316_v23 }
 0x136   :  { %850 = vmatpush.msra.mxu3 %v2358_v57 }
 0x137   :  { %658 = vmatmul.f32.vlgmr.msrb.gmra.mxu3 %v2293_v62 }
 0x138   :  { %852 = vmatpush.msra.mxu3 %v2360_v59 }
 0x13a   :  { %854 = vmatpush.msra.mxu3 %v2366_v25  ;;  %529 = vmatmul.f32.gmra.mxu1 %v2313_v21 }
 0x13b   :  { %483 = vmatmul.f32.vlgmr.msrb.gmra.mxu0 %v2293_v62 }
 0x13c   :  { %588 = vmatmul.f32.gmra.mxu2 %v2333_v39 }
 0x13f   :  { %662 = vmatmul.f32.gmra.mxu3 %v2313_v21 }
 0x142   :  { %533 = vmatmul.f32.gmra.mxu1 %v2335_v40 }
 0x143   :  { %487 = vmatmul.f32.gmra.mxu0 %v2313_v21 }
 0x144   :  { %596 = vmatmul.f32.gmra.mxu2 %v2354_v31 }
 0x147   :  { %666 = vmatmul.f32.gmra.mxu3 %v2335_v40 }
 0x14a   :  { %537 = vmatmul.f32.gmra.mxu1 %v2372_v9 }
 0x14b   :  { %491 = vmatmul.f32.gmra.mxu0 %v2335_v40 }
 0x14c   :  { %604 = vmatmul.f32.gmra.mxu2 %v272_v33  ;;  %v545_v33 = vand.u32 7, %v2267_v27 }
 0x14e   :  { %vm2456_vm6 = vcmp.lt.s32.totalorder %v545_v33, 4 }
 0x14f   :  { %670 = vmatmul.f32.gmra.mxu3 %v2372_v9 }
 0x152   :  { %541 = vmatmul.f32.gmra.mxu1 %v2370_v7 }
 0x153   :  { %495 = vmatmul.f32.gmra.mxu0 %v2372_v9 }
 0x154   :  { %612 = vmatmul.f32.gmra.mxu2 %v280_v17 }
 0x157   :  { %674 = vmatmul.f32.gmra.mxu3 %v2370_v7 }
 0x15a   :  { %754 = vmatmul.f32.vlgmr.msra.gmra.mxu1 %v2304_v8 }
 0x15b   :  { %499 = vmatmul.f32.gmra.mxu0 %v2370_v7 }
 0x15c   :  { %814 = vmatmul.f32.vlgmr.msra.gmra.mxu2 %v2293_v62 }
 0x15f   :  { %856 = vmatmul.f32.vlgmr.msra.gmra.mxu3 %v2293_v62 }
 0x162   :  { %760 = vmatmul.f32.gmra.mxu1 %v2326_v30 }
 0x163   :  { %706 = vmatmul.f32.vlgmr.msra.gmra.mxu0 %v2298_v1 }
 0x164   :  { %818 = vmatmul.f32.gmra.mxu2 %v2313_v21 }
 0x167   :  { %860 = vmatmul.f32.gmra.mxu3 %v2313_v21 }
 0x16a   :  { %766 = vmatmul.f32.gmra.mxu1 %v2346_v26 }
 0x16b   :  { %711 = vmatmul.f32.gmra.mxu0 %v2321_v3 }
 0x16c   :  { %822 = vmatmul.f32.gmra.mxu2 %v2335_v40 }
 0x16f   :  { %864 = vmatmul.f32.gmra.mxu3 %v2335_v40 }
 0x172   :  { %772 = vmatmul.f32.gmra.mxu1 %v2384_v18 }
 0x173   :  { %716 = vmatmul.f32.gmra.mxu0 %v2341_v41 }
 0x174   :  { %826 = vmatmul.f32.gmra.mxu2 %v2372_v9 }
 0x177   :  { %868 = vmatmul.f32.gmra.mxu3 %v2372_v9 }
 0x17a   :  { %778 = vmatmul.f32.gmra.mxu1 %v278_v5 }
 0x17b   :  { %721 = vmatmul.f32.gmra.mxu0 %v2378_v15 }
 0x17c   :  { %830 = vmatmul.f32.gmra.mxu2 %v2370_v7 }
 0x17d   :  { %v328_v10 = vpop.f32.mrf.mxu1 }
 0x17f   :  { %872 = vmatmul.f32.gmra.mxu3 %v2370_v7 }
 0x183   :  { %726 = vmatmul.f32.gmra.mxu0 %v2387_v51 }
 0x185   :  { %v250_v62 = vpop.f32.mrf.mxu0  ;;  %v376_v1 = vpop.f32.mrf.mxu2 }
 0x186   :  { %v332_v8 = vpop.f32.mrf.mxu1  ;;  %v329_v9 = vadd.f32 %v328_v10, %v250_v62 }
 0x187   :  { %v424_v21 = vpop.f32.mrf.mxu3 }
 0x188   :  { %v377_v16 = vadd.f32 %v376_v1, %v329_v9 }
 0x18a   :  { %v425_v29 = vadd.f32 %v424_v21, %v377_v16 }
 0x18d   :  { %v258_v23 = vpop.f32.mrf.mxu0  ;;  %v381_v3 = vpop.f32.mrf.mxu2 }
 0x18e   :  { %v336_v30 = vpop.f32.mrf.mxu1  ;;  %v333_v6 = vadd.f32 %v332_v8, %v258_v23 }
 0x18f   :  { %v430_v39 = vpop.f32.mrf.mxu3 }
 0x190   :  { %v382_v12 = vadd.f32 %v381_v3, %v333_v6 }
 0x192   :  { %v431_v20 = vadd.f32 %v430_v39, %v382_v12 }
 0x196   :  { %v266_v40 = vpop.f32.mrf.mxu0  ;;  %v386_v43 = vpop.f32.mrf.mxu2 }
 0x197   :  { %v337_v25 = vadd.f32 %v336_v30, %v266_v40 }
 0x198   :  { %v436_v26 = vpop.f32.mrf.mxu3 }
 0x199   :  { %v387_v52 = vadd.f32 %v386_v43, %v337_v25 }
 0x19b   :  { %v437_v18 = vadd.f32 %v436_v26, %v387_v52 }
 0x19f   :  { %v340_v41 = vpop.f32.mrf.mxu1 }
 0x1a7   :  { %v344_v46 = vpop.f32.mrf.mxu1  ;;  %v391_v49 = vpop.f32.mrf.mxu2 }
 0x1a8   :  { %v274_v45 = vpop.f32.mrf.mxu0 }
 0x1a9   :  { %v442_v2 = vpop.f32.mrf.mxu3  ;;  %v341_v0 = vadd.f32 %v340_v41, %v274_v45 }
 0x1ab   :  { %v392_v15 = vadd.f32 %v391_v49, %v341_v0 }
 0x1ad   :  { %v443_v51 = vadd.f32 %v442_v2, %v392_v15 }
 0x1af   :  { %v526_v54 = vpop.f32.mrf.mxu1  ;;  %v396_v55 = vpop.f32.mrf.mxu2 }
 0x1b0   :  { %v282_v50 = vpop.f32.mrf.mxu0 }
 0x1b1   :  { %v345_v19 = vadd.f32 %v344_v46, %v282_v50 }
 0x1b2   :  { %v448_v31 = vpop.f32.mrf.mxu3 }
 0x1b3   :  { %v397_v42 = vadd.f32 %v396_v55, %v345_v19 }
 0x1b5   :  { %v449_v21 = vadd.f32 %v448_v31, %v397_v42 }
 0x1b7   :  { %v530_v57 = vpop.f32.mrf.mxu1  ;;  %v581_v32 = vpop.f32.mrf.mxu2 }
 0x1b8   :  { %v484_v56 = vpop.f32.mrf.mxu0 }
 0x1b9   :  { %v485_v14 = vadd.f32 %v484_v56, %v425_v29 }
 0x1ba   :  { %v659_v34 = vpop.f32.mrf.mxu3 }
 0x1bb   :  { %v527_v23 = vadd.f32 %v526_v54, %v485_v14  ;;  %v660_v54 = vadd.f32 %v659_v34, %v581_v32 }
 0x1bf   :  { %v534_v60 = vpop.f32.mrf.mxu1  ;;  %v2443_v61 = vpop.f32.mrf.mxu2 }
 0x1c0   :  { %v488_v59 = vpop.f32.mrf.mxu0 }
 0x1c1   :  { %v489_v36 = vadd.f32 %v488_v59, %v431_v20 }
 0x1c2   :  { %v2445_v63 = vpop.f32.mrf.mxu3 }
 0x1c3   :  { %v531_v1 = vadd.f32 %v530_v57, %v489_v36 }
 0x1c5   :  { %v2478_v43 = vsel %vm2456_vm6, %v2237_v53, %v531_v1 }
 0x1c6   :  { %v2498_v2 = vand.u32 4294901760, %v2478_v43 }
 0x1c7   :  { %v538_v7 = vpop.f32.mrf.mxu1  ;;  %v2447_v11 = vpop.f32.mrf.mxu2 }
 0x1c8   :  { %v492_v4 = vpop.f32.mrf.mxu0 }
 0x1c9   :  { %v493_v22 = vadd.f32 %v492_v4, %v437_v18  ;;  %v664_v18 = vadd.f32 %v2445_v63, %v2443_v61 }
 0x1ca   :  { %v2449_v13 = vpop.f32.mrf.mxu3 }
 0x1cb   :  { %v535_v10 = vadd.f32 %v534_v60, %v493_v22  ;;  %v2514_v60 = vsub.f32 %v2478_v43, %v2498_v2 }
 0x1cd   :  { %v2468_v3 = vsel %vm2456_vm6, %v2227_v48, %v535_v10  ;;  %v2485_v48 = vsel %vm2456_vm6, %v2244_v58, %v527_v23  ;;  %v987_v12 = vand.u32 4294901760, %v2514_v60  ;;  %v668_v23 = vadd.f32 %v2449_v13, %v2447_v11 }
 0x1ce   :  { %v2488_v46 = vand.u32 4294901760, %v2468_v3  ;;  %v2503_v58 = vand.u32 4294901760, %v2485_v48 }
 0x1cf   :  { %v542_v28 = vpop.f32.mrf.mxu1  ;;  %v2452_v35 = vpop.f32.mrf.mxu2  ;;  %v988_v61 = vsub.f32 %v2514_v60, %v987_v12 }
 0x1d0   :  { %v496_v24 = vpop.f32.mrf.mxu0  ;;  %v980_v31 = vsub.f32 %v2468_v3, %v2488_v46  ;;  %v2518_v34 = vsub.f32 %v2485_v48, %v2503_v58 }
 0x1d1   :  { %v497_v5 = vadd.f32 %v496_v24, %v443_v51  ;;  %v989_v62 = vand.u32 4294901760, %v988_v61 }
 0x1d2   :  { %v2454_v37 = vpop.f32.mrf.mxu3  ;;  %v981_v4 = vand.u32 4294901760, %v980_v31  ;;  %v993_v16 = vand.u32 4294901760, %v2518_v34 }
 0x1d3   :  { %v539_v17 = vadd.f32 %v538_v7, %v497_v5 }
 0x1d4   :  { %v982_v20 = vsub.f32 %v980_v31, %v981_v4  ;;  %v994_v14 = vsub.f32 %v2518_v34, %v993_v16 }
 0x1d5   :  { %v2463_v8 = vsel %vm2456_vm6, %v2219_v44, %v539_v17 }
 0x1d6   :  { %v2473_v41 = vand.u32 4294901760, %v2463_v8  ;;  %v983_v42 = vand.u32 4294901760, %v982_v20 }
 0x1d7   :  { %v2470_v40 = vpop.f32.mrf.mxu2  ;;  %v755_v44 = vpop.f32.mrf.mxu1 }
 0x1d8   :  { %v500_v30 = vpop.f32.mrf.mxu0  ;;  %v974_v53 = vsub.f32 %v2463_v8, %v2473_v41 }
 0x1d9   :  { %v501_v39 = vadd.f32 %v500_v30, %v449_v21 }
 0x1da   :  { %v2480_v26 = vpop.f32.mrf.mxu3  ;;  %v975_v25 = vand.u32 4294901760, %v974_v53 }
 0x1db   :  { %v543_v45 = vadd.f32 %v542_v28, %v501_v39  ;;  %v995_v39 = vand.u32 4294901760, %v994_v14 }
 0x1dc   :  { %v976_v15 = vsub.f32 %v974_v53, %v975_v25 }
 0x1dd   :  { %v2493_v49 = vsel %vm2456_vm6, %v2211_v38, %v543_v45 }
 0x1de   :  { %v892_v50 = vsel %vm219_vm0, %v2493_v49, 0  ;;  %v977_v33 = vand.u32 4294901760, %v976_v15 }
 0x1df   :  { %v2505_v55 = vand.u32 4294901760, %v892_v50  ;;  %v815_v57 = vpop.f32.mrf.mxu2  ;;  %v761_v7 = vpop.f32.mrf.mxu1 }
 0x1e0   :  { %v707_v38 = vpop.f32.mrf.mxu0 }
 0x1e1   :  { %v708_v56 = vadd.f32 %v707_v38, %v660_v54  ;;  %906 = vmatpush.msrb.mxu0 %v2505_v55  ;;  %1082 = vmatpush.msrb.mxu3 %v2505_v55  ;;  %v968_v59 = vsub.f32 %v892_v50, %v2505_v55 }
 0x1e2   :  { %v857_v32 = vpop.f32.mrf.mxu3 }
 0x1e3   :  { %v756_v0 = vadd.f32 %v755_v44, %v708_v56  ;;  %908 = vmatpush.msrb.mxu0 %v2473_v41  ;;  %1031 = vmatpush.msrb.mxu2 %v968_v59  ;;  %v969_v6 = vand.u32 4294901760, %v968_v59 }
 0x1e4   :  { %1084 = vmatpush.msrb.mxu3 %v2473_v41 }
 0x1e5   :  { %v816_v9 = vadd.f32 %v815_v57, %v756_v0  ;;  %910 = vmatpush.msrb.mxu0 %v2488_v46  ;;  %1034 = vmatpush.msrb.mxu2 %v974_v53  ;;  %v970_v52 = vsub.f32 %v968_v59, %v969_v6 }
 0x1e6   :  { %1086 = vmatpush.msrb.mxu3 %v2488_v46 }
 0x1e7   :  { %v2528_v51 = vadd.f32 %v857_v32, %v816_v9  ;;  %912 = vmatpush.msrb.mxu0 %v2498_v2  ;;  %1037 = vmatpush.msrb.mxu2 %v980_v31  ;;  %v971_v19 = vand.u32 4294901760, %v970_v52  ;;  %v819_v29 = vpop.f32.mrf.mxu2  ;;  %v767_v1 = vpop.f32.mrf.mxu1  ;;  %v676_v52 = vadd.f32 %v2480_v26, %v2470_v40 }
 0x1e8   :  { %1088 = vmatpush.msrb.mxu3 %v2498_v2  ;;  %v712_v22 = vpop.f32.mrf.mxu0 }
 0x1e9   :  { %v877_v24 = vsel %vm203_vm3, %v2528_v51, 0  ;;  %v713_v28 = vadd.f32 %v712_v22, %v664_v18  ;;  %914 = vmatpush.msrb.mxu0 %v2503_v58  ;;  %972 = vmatpush.msrb.mxu1 %v971_v19 }
 0x1ea   :  { %v2536_v63 = vand.u32 4294901760, %v877_v24  ;;  %1040 = vmatpush.msrb.mxu2 %v2514_v60  ;;  %1090 = vmatpush.msrb.mxu3 %v2503_v58  ;;  %v861_v5 = vpop.f32.mrf.mxu3  ;;  %v672_v60 = vadd.f32 %v2454_v37, %v2452_v35 }
 0x1eb   :  { %v762_v36 = vadd.f32 %v761_v7, %v713_v28  ;;  %1136 = vmatpush.msra.mxu0 %v969_v6  ;;  %978 = vmatpush.msrb.mxu1 %v977_v33 }
 0x1ec   :  { %v2542_v17 = vsub.f32 %v877_v24, %v2536_v63  ;;  %1043 = vmatpush.msrb.mxu2 %v2518_v34 }
 0x1ed   :  { %v820_v10 = vadd.f32 %v819_v29, %v762_v36  ;;  %1140 = vmatpush.msra.mxu0 %v975_v25  ;;  %984 = vmatpush.msrb.mxu1 %v983_v42 }
 0x1ee   :  { %1046 = vmatmul.f32.vlgmr.msrb.gmra.mxu2 %v2542_v17  ;;  %v2547_v21 = vand.u32 4294901760, %v2542_v17 }
 0x1ef   :  { %v2551_v30 = vadd.f32 %v861_v5, %v820_v10  ;;  %1144 = vmatpush.msra.mxu0 %v981_v4  ;;  %990 = vmatpush.msrb.mxu1 %v989_v62  ;;  %v823_v54 = vpop.f32.mrf.mxu2 }
 0x1f0   :  { %v717_v44 = vpop.f32.mrf.mxu0  ;;  %1094 = vmatmul.f32.vlgmr.msrb.gmra.mxu3 %v2547_v21  ;;  %v918_v45 = vsub.f32 %v2542_v17, %v2547_v21 }
 0x1f1   :  { %v880_v53 = vsel %vm203_vm3, %v2551_v30, 0  ;;  %v718_v50 = vadd.f32 %v717_v44, %v668_v23  ;;  %1148 = vmatpush.msra.mxu0 %v987_v12  ;;  %996 = vmatpush.msrb.mxu1 %v995_v39  ;;  %v2622_v14 = vand.u32 4294901760, %v2551_v30 }
 0x1f2   :  { %v2558_v31 = vand.u32 4294901760, %v880_v53  ;;  %v865_v11 = vpop.f32.mrf.mxu3  ;;  %998 = vmatmul.f32.vlgmr.msrb.gmra.mxu1 %v2536_v63  ;;  %v2561_v13 = vand.u32 4294901760, %v918_v45  ;;  %v2633_v45 = vand.u32 4294901760, %v2528_v51 }
 0x1f3   :  { %v768_v38 = vadd.f32 %v767_v1, %v718_v50  ;;  %1152 = vmatpush.msra.mxu0 %v993_v16  ;;  %1186 = vmatpush.msra.mxu1 %v2505_v55  ;;  %v773_v55 = vpop.f32.mrf.mxu1 }
 0x1f4   :  { %v2565_v56 = vsub.f32 %v880_v53, %v2558_v31  ;;  %920 = vmatmul.f32.vlgmr.msrb.gmra.mxu0 %v2561_v13 }
 0x1f5   :  { %v824_v57 = vadd.f32 %v823_v54, %v768_v38  ;;  %1188 = vmatpush.msra.mxu1 %v2473_v41 }
 0x1f6   :  { %1051 = vmatmul.f32.gmra.mxu2 %v2565_v56  ;;  %v2571_v59 = vand.u32 4294901760, %v2565_v56 }
 0x1f7   :  { %v866_v25 = vadd.f32 %v865_v11, %v824_v57  ;;  %1190 = vmatpush.msra.mxu1 %v2488_v46  ;;  %v827_v4 = vpop.f32.mrf.mxu2  ;;  %v1317_v11 = vsub.f32 %v2551_v30, %v2622_v14 }
 0x1f8   :  { %v722_v32 = vpop.f32.mrf.mxu0  ;;  %1100 = vmatmul.f32.gmra.mxu3 %v2571_v59  ;;  %v926_v34 = vsub.f32 %v2565_v56, %v2571_v59 }
 0x1f9   :  { %v883_v41 = vsel %vm203_vm3, %v866_v25, 0  ;;  %v723_v0 = vadd.f32 %v722_v32, %v672_v60  ;;  %1192 = vmatpush.msra.mxu1 %v2498_v2  ;;  %v2616_v5 = vand.u32 4294901760, %v866_v25 }
 0x1fa   :  { %v2581_v6 = vand.u32 4294901760, %v883_v41  ;;  %1002 = vmatmul.f32.gmra.mxu1 %v2558_v31  ;;  %v2584_v35 = vand.u32 4294901760, %v926_v34  ;;  %v869_v7 = vpop.f32.mrf.mxu3 }
 0x1fb   :  { %v774_v37 = vadd.f32 %v773_v55, %v723_v0  ;;  %1194 = vmatpush.msra.mxu1 %v2503_v58  ;;  %v779_v19 = vpop.f32.mrf.mxu1  ;;  %v1311_v53 = vsub.f32 %v866_v25, %v2616_v5  ;;  %v1323_v25 = vsub.f32 %v2528_v51, %v2633_v45 }
 0x1fc   :  { %v2588_v46 = vsub.f32 %v883_v41, %v2581_v6  ;;  %928 = vmatmul.f32.gmra.mxu0 %v2584_v35  ;;  %v1318_v41 = vand.u32 4294901760, %v1317_v11 }
 0x1fd   :  { %v828_v9 = vadd.f32 %v827_v4, %v774_v37  ;;  %v1312_v55 = vand.u32 4294901760, %v1311_v53  ;;  %v1324_v37 = vand.u32 4294901760, %v1323_v25 }
 0x1fe   :  { %1056 = vmatmul.f32.gmra.mxu2 %v2588_v46  ;;  %v2593_v2 = vand.u32 4294901760, %v2588_v46 }
 0x1ff   :  { %v870_v15 = vadd.f32 %v869_v7, %v828_v9  ;;  %v831_v26 = vpop.f32.mrf.mxu2  ;;  %v1313_v51 = vsub.f32 %v1311_v53, %v1312_v55  ;;  %v1319_v9 = vsub.f32 %v1317_v11, %v1318_v41 }
 0x200   :  { %v727_v12 = vpop.f32.mrf.mxu0  ;;  %1106 = vmatmul.f32.gmra.mxu3 %v2593_v2  ;;  %v934_v58 = vsub.f32 %v2588_v46, %v2593_v2 }
 0x201   :  { %v886_v16 = vsel %vm203_vm3, %v870_v15, 0  ;;  %v728_v18 = vadd.f32 %v727_v12, %v676_v52  ;;  %v2610_v28 = vand.u32 4294901760, %v870_v15  ;;  %v1314_v52 = vand.u32 4294901760, %v1313_v51 }
 0x202   :  { %v2601_v20 = vand.u32 4294901760, %v886_v16  ;;  %1006 = vmatmul.f32.gmra.mxu1 %v2581_v6  ;;  %v2604_v22 = vand.u32 4294901760, %v934_v58  ;;  %v873_v33 = vpop.f32.mrf.mxu3  ;;  %v1320_v12 = vand.u32 4294901760, %v1319_v9 }
 0x203   :  { %v780_v24 = vadd.f32 %v779_v19, %v728_v18  ;;  %v1305_v1 = vsub.f32 %v870_v15, %v2610_v28  ;;  %v1325_v15 = vsub.f32 %v1323_v25, %v1324_v37 }
 0x204   :  { %v2607_v40 = vsub.f32 %v886_v16, %v2601_v20  ;;  %936 = vmatmul.f32.gmra.mxu0 %v2604_v22 }
 0x205   :  { %v832_v29 = vadd.f32 %v831_v26, %v780_v24  ;;  %v1306_v38 = vand.u32 4294901760, %v1305_v1  ;;  %v1326_v58 = vand.u32 4294901760, %v1325_v15 }
 0x206   :  { %1061 = vmatmul.f32.gmra.mxu2 %v2607_v40  ;;  %v2614_v61 = vand.u32 4294901760, %v2607_v40 }
 0x207   :  { %v874_v36 = vadd.f32 %v873_v33, %v832_v29  ;;  %v1307_v34 = vsub.f32 %v1305_v1, %v1306_v38 }
 0x208   :  { %1112 = vmatmul.f32.gmra.mxu3 %v2614_v61  ;;  %v942_v42 = vsub.f32 %v2607_v40, %v2614_v61 }
 0x209   :  { %v889_v10 = vsel %vm203_vm3, %v874_v36, 0  ;;  %v1223_v62 = vsel %vm219_vm0, %v874_v36, 0  ;;  %v1308_v7 = vand.u32 4294901760, %v1307_v34 }
 0x20a   :  { %v2627_v23 = vand.u32 4294901760, %v889_v10  ;;  %v1236_v39 = vand.u32 4294901760, %v1223_v62  ;;  %1010 = vmatmul.f32.gmra.mxu1 %v2601_v20  ;;  %v2630_v44 = vand.u32 4294901760, %v942_v42 }
 0x20c   :  { %v2637_v50 = vsub.f32 %v889_v10, %v2627_v23  ;;  %v1299_v54 = vsub.f32 %v1223_v62, %v1236_v39  ;;  %944 = vmatmul.f32.gmra.mxu0 %v2630_v44  ;;  %1237 = vmatpush.msra.mxu2 %v1236_v39 }
 0x20d   :  { %1413 = vmatpush.msrb.mxu1 %v1236_v39 }
 0x20e   :  { %v1300_v57 = vand.u32 4294901760, %v1299_v54  ;;  %1066 = vmatmul.f32.gmra.mxu2 %v2637_v50  ;;  %1362 = vmatpush.msrb.mxu0 %v1299_v54  ;;  %v2644_v60 = vand.u32 4294901760, %v2637_v50 }
 0x20f   :  { %1239 = vmatpush.msra.mxu2 %v2610_v28  ;;  %1415 = vmatpush.msrb.mxu1 %v2610_v28 }
 0x210   :  { %1118 = vmatmul.f32.gmra.mxu3 %v2644_v60  ;;  %1365 = vmatpush.msrb.mxu0 %v1305_v1  ;;  %v950_v30 = vsub.f32 %v2637_v50, %v2644_v60  ;;  %v1301_v32 = vsub.f32 %v1299_v54, %v1300_v57 }
 0x211   :  { %1241 = vmatpush.msra.mxu2 %v2616_v5  ;;  %1417 = vmatpush.msrb.mxu1 %v2616_v5 }
 0x212   :  { %1014 = vmatmul.f32.gmra.mxu1 %v2627_v23  ;;  %1368 = vmatpush.msrb.mxu0 %v1311_v53  ;;  %v951_v0 = vand.u32 4294901760, %v950_v30  ;;  %v1302_v4 = vand.u32 4294901760, %v1301_v32 }
 0x213   :  { %1243 = vmatpush.msra.mxu2 %v2622_v14  ;;  %1419 = vmatpush.msrb.mxu1 %v2622_v14 }
 0x214   :  { %952 = vmatmul.f32.gmra.mxu0 %v951_v0  ;;  %1303 = vmatpush.msra.mxu3 %v1302_v4  ;;  %v1216_v4 = vand.u32 15, %v2267_v27 }
 0x215   :  { %1245 = vmatpush.msra.mxu2 %v2633_v45  ;;  %1371 = vmatpush.msrb.mxu0 %v1317_v11 }
 0x216   :  { %1421 = vmatpush.msrb.mxu1 %v2633_v45  ;;  %1251 = vmatmul.f32.vlgmr.msra.gmra.mxu2 %v2561_v13  ;;  %vm2714_vm7 = vcmp.lt.s32.totalorder %v1216_v4, 8 }
 0x217   :  { %1467 = vmatpush.msrb.mxu2 %v1300_v57  ;;  %1309 = vmatpush.msra.mxu3 %v1308_v7 }
 0x218   :  { %1374 = vmatpush.msrb.mxu0 %v1323_v25 }
 0x219   :  { %1471 = vmatpush.msrb.mxu2 %v1306_v38  ;;  %1315 = vmatpush.msra.mxu3 %v1314_v52 }
 0x21a   :  { %1196 = vmatmul.f32.vlgmr.msra.gmra.mxu1 %v2536_v63 }
 0x21b   :  { %1475 = vmatpush.msrb.mxu2 %v1312_v55  ;;  %1321 = vmatpush.msra.mxu3 %v1320_v12 }
 0x21c   :  { %1154 = vmatmul.f32.vlgmr.msra.gmra.mxu0 %v2536_v63 }
 0x21d   :  { %1479 = vmatpush.msrb.mxu2 %v1318_v41  ;;  %1327 = vmatpush.msra.mxu3 %v1326_v58 }
 0x21e   :  { %1329 = vmatmul.f32.vlgmr.msra.gmra.mxu3 %v2536_v63  ;;  %1259 = vmatmul.f32.gmra.mxu2 %v2584_v35 }
 0x21f   :  { %1483 = vmatpush.msrb.mxu2 %v1324_v37  ;;  %1517 = vmatpush.msrb.mxu3 %v1236_v39 }
 0x221   :  { %1519 = vmatpush.msrb.mxu3 %v2610_v28 }
 0x222   :  { %1200 = vmatmul.f32.gmra.mxu1 %v2558_v31 }
 0x223   :  { %1521 = vmatpush.msrb.mxu3 %v2616_v5 }
 0x224   :  { %1158 = vmatmul.f32.gmra.mxu0 %v2558_v31 }
 0x225   :  { %1523 = vmatpush.msrb.mxu3 %v2622_v14 }
 0x226   :  { %1333 = vmatmul.f32.gmra.mxu3 %v2558_v31  ;;  %1267 = vmatmul.f32.gmra.mxu2 %v2604_v22 }
 0x227   :  { %1525 = vmatpush.msrb.mxu3 %v2633_v45 }
 0x22a   :  { %1204 = vmatmul.f32.gmra.mxu1 %v2581_v6 }
 0x22c   :  { %1162 = vmatmul.f32.gmra.mxu0 %v2581_v6 }
 0x22e   :  { %1337 = vmatmul.f32.gmra.mxu3 %v2581_v6  ;;  %1275 = vmatmul.f32.gmra.mxu2 %v2630_v44 }
 0x232   :  { %1208 = vmatmul.f32.gmra.mxu1 %v2601_v20 }
 0x234   :  { %1166 = vmatmul.f32.gmra.mxu0 %v2601_v20 }
 0x236   :  { %1341 = vmatmul.f32.gmra.mxu3 %v2601_v20  ;;  %1283 = vmatmul.f32.gmra.mxu2 %v951_v0 }
 0x23a   :  { %1212 = vmatmul.f32.gmra.mxu1 %v2627_v23 }
 0x23c   :  { %1170 = vmatmul.f32.gmra.mxu0 %v2627_v23 }
 0x23e   :  { %1345 = vmatmul.f32.gmra.mxu3 %v2627_v23  ;;  %1485 = vmatmul.f32.vlgmr.msrb.gmra.mxu2 %v2536_v63 }
 0x242   :  { %1425 = vmatmul.f32.vlgmr.msrb.gmra.mxu1 %v2547_v21 }
 0x244   :  { %1377 = vmatmul.f32.vlgmr.msrb.gmra.mxu0 %v2542_v17 }
 0x246   :  { %1527 = vmatmul.f32.vlgmr.msrb.gmra.mxu3 %v2536_v63  ;;  %1489 = vmatmul.f32.gmra.mxu2 %v2558_v31 }
 0x24a   :  { %1431 = vmatmul.f32.gmra.mxu1 %v2571_v59 }
 0x24c   :  { %1382 = vmatmul.f32.gmra.mxu0 %v2565_v56 }
 0x24e   :  { %1531 = vmatmul.f32.gmra.mxu3 %v2558_v31  ;;  %1493 = vmatmul.f32.gmra.mxu2 %v2581_v6 }
 0x252   :  { %1437 = vmatmul.f32.gmra.mxu1 %v2593_v2 }
 0x254   :  { %1387 = vmatmul.f32.gmra.mxu0 %v2588_v46 }
 0x256   :  { %1535 = vmatmul.f32.gmra.mxu3 %v2581_v6  ;;  %1497 = vmatmul.f32.gmra.mxu2 %v2601_v20 }
 0x25a   :  { %1443 = vmatmul.f32.gmra.mxu1 %v2614_v61 }
 0x25c   :  { %1392 = vmatmul.f32.gmra.mxu0 %v2607_v40 }
 0x25e   :  { %1539 = vmatmul.f32.gmra.mxu3 %v2601_v20  ;;  %1501 = vmatmul.f32.gmra.mxu2 %v2627_v23 }
 0x262   :  { %1449 = vmatmul.f32.gmra.mxu1 %v2644_v60 }
 0x264   :  { %1397 = vmatmul.f32.gmra.mxu0 %v2637_v50 }
 0x266   :  { %1543 = vmatmul.f32.gmra.mxu3 %v2627_v23 }
 0x26f   :  { %v999_v63 = vpop.f32.mrf.mxu1 }
 0x271   :  { %v921_v17 = vpop.f32.mrf.mxu0  ;;  %v1047_v21 = vpop.f32.mrf.mxu2 }
 0x272   :  { %v1000_v31 = vadd.f32 %v999_v63, %v921_v17 }
 0x273   :  { %v1095_v13 = vpop.f32.mrf.mxu3 }
 0x274   :  { %v1048_v56 = vadd.f32 %v1047_v21, %v1000_v31 }
 0x276   :  { %v1096_v59 = vadd.f32 %v1095_v13, %v1048_v56 }
 0x277   :  { %v1003_v6 = vpop.f32.mrf.mxu1 }
 0x279   :  { %v929_v35 = vpop.f32.mrf.mxu0  ;;  %v1052_v46 = vpop.f32.mrf.mxu2 }
 0x27a   :  { %v1004_v45 = vadd.f32 %v1003_v6, %v929_v35 }
 0x27b   :  { %v1101_v2 = vpop.f32.mrf.mxu3 }
 0x27c   :  { %v1053_v57 = vadd.f32 %v1052_v46, %v1004_v45 }
 0x27e   :  { %v1102_v32 = vadd.f32 %v1101_v2, %v1053_v57 }
 0x27f   :  { %v1007_v16 = vpop.f32.mrf.mxu1 }
 0x281   :  { %v937_v18 = vpop.f32.mrf.mxu0  ;;  %v1057_v19 = vpop.f32.mrf.mxu2 }
 0x282   :  { %v1008_v23 = vadd.f32 %v1007_v16, %v937_v18 }
 0x283   :  { %v1107_v20 = vpop.f32.mrf.mxu3 }
 0x284   :  { %v1058_v11 = vadd.f32 %v1057_v19, %v1008_v23 }
 0x286   :  { %v1108_v60 = vadd.f32 %v1107_v20, %v1058_v11 }
 0x287   :  { %v1011_v22 = vpop.f32.mrf.mxu1 }
 0x289   :  { %v945_v24 = vpop.f32.mrf.mxu0  ;;  %v1062_v40 = vpop.f32.mrf.mxu2 }
 0x28a   :  { %v1012_v44 = vadd.f32 %v1011_v22, %v945_v24 }
 0x28b   :  { %v1113_v26 = vpop.f32.mrf.mxu3 }
 0x28c   :  { %v1063_v38 = vadd.f32 %v1062_v40, %v1012_v44 }
 0x28e   :  { %v1114_v55 = vadd.f32 %v1113_v26, %v1063_v38 }
 0x28f   :  { %v1015_v28 = vpop.f32.mrf.mxu1 }
 0x291   :  { %v953_v29 = vpop.f32.mrf.mxu0  ;;  %v1067_v33 = vpop.f32.mrf.mxu2 }
 0x292   :  { %v1016_v30 = vadd.f32 %v1015_v28, %v953_v29 }
 0x293   :  { %v1119_v5 = vpop.f32.mrf.mxu3 }
 0x294   :  { %v1068_v9 = vadd.f32 %v1067_v33, %v1016_v30 }
 0x296   :  { %v1120_v31 = vadd.f32 %v1119_v5, %v1068_v9 }
 0x297   :  { %v1197_v61 = vpop.f32.mrf.mxu1 }
 0x299   :  { %v1155_v36 = vpop.f32.mrf.mxu0  ;;  %v1252_v42 = vpop.f32.mrf.mxu2 }
 0x29a   :  { %v1156_v15 = vadd.f32 %v1155_v36, %v1096_v59 }
 0x29c   :  { %v1198_v13 = vadd.f32 %v1197_v61, %v1156_v15 }
 0x29f   :  { %v1201_v14 = vpop.f32.mrf.mxu1 }
 0x2a1   :  { %v1330_v10 = vpop.f32.mrf.mxu3  ;;  %v1159_v62 = vpop.f32.mrf.mxu0 }
 0x2a2   :  { %v2703_v1 = vpop.f32.mrf.mxu2  ;;  %v1160_v7 = vadd.f32 %v1159_v62, %v1102_v32  ;;  %v1331_v40 = vadd.f32 %v1330_v10, %v1252_v42 }
 0x2a4   :  { %v1202_v63 = vadd.f32 %v1201_v14, %v1160_v7 }
 0x2a7   :  { %v1205_v39 = vpop.f32.mrf.mxu1 }
 0x2a9   :  { %v2705_v53 = vpop.f32.mrf.mxu3  ;;  %v1163_v50 = vpop.f32.mrf.mxu0 }
 0x2aa   :  { %v2707_v54 = vpop.f32.mrf.mxu2  ;;  %v1164_v34 = vadd.f32 %v1163_v50, %v1108_v60  ;;  %v1335_v38 = vadd.f32 %v2705_v53, %v2703_v1 }
 0x2ac   :  { %v1206_v12 = vadd.f32 %v1205_v39, %v1164_v34 }
 0x2ae   :  { %v2726_v56 = vsel %vm2714_vm7, %v2468_v3, %v1206_v12  ;;  %v2746_v3 = vsel %vm2714_vm7, %v2485_v48, %v1198_v13 }
 0x2af   :  { %v1209_v25 = vpop.f32.mrf.mxu1  ;;  %v2741_v18 = vand.u32 4294901760, %v2726_v56  ;;  %v2765_v28 = vand.u32 4294901760, %v2746_v3 }
 0x2b1   :  { %v2709_v41 = vpop.f32.mrf.mxu3  ;;  %v1167_v0 = vpop.f32.mrf.mxu0  ;;  %v1651_v48 = vsub.f32 %v2726_v56, %v2741_v18  ;;  %v1663_v62 = vsub.f32 %v2746_v3, %v2765_v28 }
 0x2b2   :  { %v1168_v51 = vadd.f32 %v1167_v0, %v1114_v55  ;;  %v2712_v37 = vpop.f32.mrf.mxu2 }
 0x2b3   :  { %v1652_v23 = vand.u32 4294901760, %v1651_v48 }
 0x2b4   :  { %v1210_v52 = vadd.f32 %v1209_v25, %v1168_v51  ;;  %v1664_v25 = vand.u32 4294901760, %v1663_v62 }
 0x2b5   :  { %v1653_v60 = vsub.f32 %v1651_v48, %v1652_v23 }
 0x2b6   :  { %v2721_v17 = vsel %vm2714_vm7, %v2463_v8, %v1210_v52  ;;  %v2738_v8 = vsel %vm2714_vm7, %v2478_v43, %v1202_v63  ;;  %v1665_v9 = vsub.f32 %v1663_v62, %v1664_v25 }
 0x2b7   :  { %v1213_v21 = vpop.f32.mrf.mxu1  ;;  %v2733_v2 = vand.u32 4294901760, %v2721_v17  ;;  %v2756_v43 = vand.u32 4294901760, %v2738_v8  ;;  %v1654_v7 = vand.u32 4294901760, %v1653_v60 }
 0x2b9   :  { %v2728_v59 = vpop.f32.mrf.mxu3  ;;  %v1171_v6 = vpop.f32.mrf.mxu0  ;;  %v1645_v20 = vsub.f32 %v2721_v17, %v2733_v2  ;;  %v1657_v36 = vsub.f32 %v2738_v8, %v2756_v43 }
 0x2ba   :  { %v1172_v35 = vadd.f32 %v1171_v6, %v1120_v31  ;;  %v2730_v46 = vpop.f32.mrf.mxu2  ;;  %v1666_v31 = vand.u32 4294901760, %v1665_v9 }
 0x2bb   :  { %v1646_v42 = vand.u32 4294901760, %v1645_v20  ;;  %v1658_v50 = vand.u32 4294901760, %v1657_v36 }
 0x2bc   :  { %v1214_v16 = vadd.f32 %v1213_v21, %v1172_v35  ;;  %v1339_v21 = vadd.f32 %v2709_v41, %v2707_v54 }
 0x2bd   :  { %v1647_v45 = vsub.f32 %v1645_v20, %v1646_v42  ;;  %v1659_v51 = vsub.f32 %v1657_v36, %v1658_v50 }
 0x2be   :  { %v2751_v19 = vsel %vm2714_vm7, %v2493_v49, %v1214_v16 }
 0x2bf   :  { %v1563_v22 = vsel %vm219_vm0, %v2751_v19, 0  ;;  %v1426_v24 = vpop.f32.mrf.mxu1  ;;  %v1648_v4 = vand.u32 4294901760, %v1647_v45  ;;  %v1660_v12 = vand.u32 4294901760, %v1659_v51 }
 0x2c0   :  { %v2760_v26 = vand.u32 4294901760, %v1563_v22 }
 0x2c1   :  { %v2767_v49 = vpop.f32.mrf.mxu3  ;;  %v1378_v29 = vpop.f32.mrf.mxu0 }
 0x2c2   :  { %v1379_v33 = vadd.f32 %v1378_v29, %v1331_v40  ;;  %v1486_v61 = vpop.f32.mrf.mxu2  ;;  %1577 = vmatpush.msra.mxu0 %v2760_v26  ;;  %1753 = vmatpush.msra.mxu3 %v2760_v26  ;;  %v1639_v5 = vsub.f32 %v1563_v22, %v2760_v26  ;;  %v1347_v45 = vadd.f32 %v2767_v49, %v2730_v46 }
 0x2c4   :  { %v1427_v14 = vadd.f32 %v1426_v24, %v1379_v33  ;;  %1579 = vmatpush.msra.mxu0 %v2733_v2  ;;  %1702 = vmatpush.msra.mxu2 %v1639_v5  ;;  %v1640_v10 = vand.u32 4294901760, %v1639_v5 }
 0x2c5   :  { %1755 = vmatpush.msra.mxu3 %v2733_v2 }
 0x2c6   :  { %v1487_v39 = vadd.f32 %v1486_v61, %v1427_v14  ;;  %1581 = vmatpush.msra.mxu0 %v2741_v18  ;;  %1705 = vmatpush.msra.mxu2 %v1645_v20  ;;  %v1641_v44 = vsub.f32 %v1639_v5, %v1640_v10  ;;  %v1343_v61 = vadd.f32 %v2728_v59, %v2712_v37 }
 0x2c7   :  { %1757 = vmatpush.msra.mxu3 %v2741_v18  ;;  %v1432_v11 = vpop.f32.mrf.mxu1 }
 0x2c8   :  { %1583 = vmatpush.msra.mxu0 %v2756_v43  ;;  %1708 = vmatpush.msra.mxu2 %v1651_v48  ;;  %v1642_v57 = vand.u32 4294901760, %v1641_v44 }
 0x2c9   :  { %v1528_v55 = vpop.f32.mrf.mxu3  ;;  %1759 = vmatpush.msra.mxu3 %v2756_v43  ;;  %v1383_v30 = vpop.f32.mrf.mxu0 }
 0x2ca   :  { %v1529_v32 = vadd.f32 %v1528_v55, %v1487_v39  ;;  %v1384_v34 = vadd.f32 %v1383_v30, %v1335_v38  ;;  %v1490_v0 = vpop.f32.mrf.mxu2  ;;  %1585 = vmatpush.msra.mxu0 %v2765_v28  ;;  %1643 = vmatpush.msra.mxu1 %v1642_v57 }
 0x2cb   :  { %1711 = vmatpush.msra.mxu2 %v1657_v36  ;;  %1761 = vmatpush.msra.mxu3 %v2765_v28 }
 0x2cc   :  { %v1548_v1 = vsel %vm203_vm3, %v1529_v32, 0  ;;  %v1433_v53 = vadd.f32 %v1432_v11, %v1384_v34  ;;  %1807 = vmatpush.msrb.mxu0 %v1640_v10  ;;  %1649 = vmatpush.msra.mxu1 %v1648_v4 }
 0x2cd   :  { %v2787_v52 = vand.u32 4294901760, %v1548_v1  ;;  %1714 = vmatpush.msra.mxu2 %v1663_v62 }
 0x2ce   :  { %v1491_v15 = vadd.f32 %v1490_v0, %v1433_v53  ;;  %1811 = vmatpush.msrb.mxu0 %v1646_v42  ;;  %1655 = vmatpush.msra.mxu1 %v1654_v7 }
 0x2cf   :  { %v1587_v58 = vsub.f32 %v1548_v1, %v2787_v52  ;;  %v1438_v63 = vpop.f32.mrf.mxu1 }
 0x2d0   :  { %1815 = vmatpush.msrb.mxu0 %v1652_v23  ;;  %1661 = vmatpush.msra.mxu1 %v1660_v12 }
 0x2d1   :  { %v1588_v13 = vand.u32 4294901760, %v1587_v58  ;;  %v1532_v6 = vpop.f32.mrf.mxu3  ;;  %1717 = vmatmul.f32.vlgmr.msra.gmra.mxu2 %v1587_v58  ;;  %v1388_v35 = vpop.f32.mrf.mxu0 }
 0x2d2   :  { %v1533_v16 = vadd.f32 %v1532_v6, %v1491_v15  ;;  %v1389_v20 = vadd.f32 %v1388_v35, %v1339_v21  ;;  %v1494_v22 = vpop.f32.mrf.mxu2  ;;  %1819 = vmatpush.msrb.mxu0 %v1658_v50  ;;  %1667 = vmatpush.msra.mxu1 %v1666_v31 }
 0x2d3   :  { %v1589_v24 = vsub.f32 %v1587_v58, %v1588_v13  ;;  %1765 = vmatmul.f32.vlgmr.msra.gmra.mxu3 %v1588_v13  ;;  %1669 = vmatmul.f32.vlgmr.msra.gmra.mxu1 %v2787_v52 }
 0x2d4   :  { %v1551_v40 = vsel %vm203_vm3, %v1533_v16, 0  ;;  %v1439_v48 = vadd.f32 %v1438_v63, %v1389_v20  ;;  %1823 = vmatpush.msrb.mxu0 %v1664_v25  ;;  %1857 = vmatpush.msrb.mxu1 %v2760_v26 }
 0x2d5   :  { %v1590_v54 = vand.u32 4294901760, %v1589_v24  ;;  %v2795_v41 = vand.u32 4294901760, %v1551_v40 }
 0x2d6   :  { %v1495_v29 = vadd.f32 %v1494_v22, %v1439_v48  ;;  %1859 = vmatpush.msrb.mxu1 %v2733_v2 }
 0x2d7   :  { %v1595_v33 = vsub.f32 %v1551_v40, %v2795_v41  ;;  %1591 = vmatmul.f32.vlgmr.msra.gmra.mxu0 %v1590_v54  ;;  %v1444_v5 = vpop.f32.mrf.mxu1 }
 0x2d8   :  { %1861 = vmatpush.msrb.mxu1 %v2741_v18 }
 0x2d9   :  { %v1536_v36 = vpop.f32.mrf.mxu3  ;;  %1722 = vmatmul.f32.gmra.mxu2 %v1595_v33  ;;  %v1393_v42 = vpop.f32.mrf.mxu0  ;;  %v1596_v14 = vand.u32 4294901760, %v1595_v33 }
 0x2da   :  { %v1537_v26 = vadd.f32 %v1536_v36, %v1495_v29  ;;  %v1394_v10 = vadd.f32 %v1393_v42, %v1343_v61  ;;  %1863 = vmatpush.msrb.mxu1 %v2756_v43  ;;  %v1498_v62 = vpop.f32.mrf.mxu2  ;;  %v1887_v61 = vand.u32 31, %v2267_v27 }
 0x2db   :  { %1771 = vmatmul.f32.gmra.mxu3 %v1596_v14  ;;  %1673 = vmatmul.f32.gmra.mxu1 %v2795_v41  ;;  %v1597_v2 = vsub.f32 %v1595_v33, %v1596_v14 }
 0x2dc   :  { %v1554_v23 = vsel %vm203_vm3, %v1537_v26, 0  ;;  %v1445_v39 = vadd.f32 %v1444_v5, %v1394_v10  ;;  %1865 = vmatpush.msrb.mxu1 %v2765_v28  ;;  %vm2815_vm8 = vcmp.lt.s32.totalorder %v1887_v61, 16 }
 0x2dd   :  { %v1602_v37 = vand.u32 4294901760, %v1554_v23  ;;  %v1598_v59 = vand.u32 4294901760, %v1597_v2 }
 0x2de   :  { %v1499_v18 = vadd.f32 %v1498_v62, %v1445_v39 }
 0x2df   :  { %v1603_v44 = vsub.f32 %v1554_v23, %v1602_v37  ;;  %1599 = vmatmul.f32.gmra.mxu0 %v1598_v59  ;;  %v1450_v60 = vpop.f32.mrf.mxu1 }
 0x2e1   :  { %v1540_v50 = vpop.f32.mrf.mxu3  ;;  %1727 = vmatmul.f32.gmra.mxu2 %v1603_v44  ;;  %v1398_v43 = vpop.f32.mrf.mxu0  ;;  %v1604_v11 = vand.u32 4294901760, %v1603_v44 }
 0x2e2   :  { %v1541_v38 = vadd.f32 %v1540_v50, %v1499_v18  ;;  %v1399_v57 = vadd.f32 %v1398_v43, %v1347_v45  ;;  %v1502_v32 = vpop.f32.mrf.mxu2 }
 0x2e3   :  { %1777 = vmatmul.f32.gmra.mxu3 %v1604_v11  ;;  %1677 = vmatmul.f32.gmra.mxu1 %v1602_v37  ;;  %v1605_v25 = vsub.f32 %v1603_v44, %v1604_v11 }
 0x2e4   :  { %v1557_v28 = vsel %vm203_vm3, %v1541_v38, 0  ;;  %v1451_v55 = vadd.f32 %v1450_v60, %v1399_v57 }
 0x2e5   :  { %v1610_v30 = vand.u32 4294901760, %v1557_v28  ;;  %v1606_v34 = vand.u32 4294901760, %v1605_v25 }
 0x2e6   :  { %v1503_v0 = vadd.f32 %v1502_v32, %v1451_v55 }
 0x2e7   :  { %v1611_v4 = vsub.f32 %v1557_v28, %v1610_v30  ;;  %1607 = vmatmul.f32.gmra.mxu0 %v1606_v34 }
 0x2e9   :  { %v1544_v46 = vpop.f32.mrf.mxu3  ;;  %1732 = vmatmul.f32.gmra.mxu2 %v1611_v4  ;;  %v1612_v49 = vand.u32 4294901760, %v1611_v4 }
 0x2ea   :  { %v1545_v51 = vadd.f32 %v1544_v46, %v1503_v0 }
 0x2eb   :  { %1783 = vmatmul.f32.gmra.mxu3 %v1612_v49  ;;  %1681 = vmatmul.f32.gmra.mxu1 %v1610_v30  ;;  %v1613_v1 = vsub.f32 %v1611_v4, %v1612_v49  ;;  %v1895_v49 = vrot.slane %v2222_v47, 1 }
 0x2ec   :  { %v1560_v53 = vsel %vm203_vm3, %v1545_v51, 0 }
 0x2ed   :  { %v1618_v7 = vand.u32 4294901760, %v1560_v53  ;;  %v1614_v9 = vand.u32 4294901760, %v1613_v1 }
 0x2ef   :  { %v1619_v15 = vsub.f32 %v1560_v53, %v1618_v7  ;;  %1615 = vmatmul.f32.gmra.mxu0 %v1614_v9  ;;  %v1896_v9 = vsel %vm203_vm3, %v1895_v49, 0 }
 0x2f1   :  { %1737 = vmatmul.f32.gmra.mxu2 %v1619_v15  ;;  %v1620_v12 = vand.u32 4294901760, %v1619_v15 }
 0x2f3   :  { %1789 = vmatmul.f32.gmra.mxu3 %v1620_v12  ;;  %1685 = vmatmul.f32.gmra.mxu1 %v1618_v7  ;;  %v1621_v58 = vsub.f32 %v1619_v15, %v1620_v12 }
 0x2f5   :  { %v1622_v63 = vand.u32 4294901760, %v1621_v58  ;;  %v2849_v58 = vand.u32 4294901760, %v1896_v9 }
 0x2f7   :  { %1623 = vmatmul.f32.gmra.mxu0 %v1622_v63 }
 0x2fb   :  { %1867 = vmatmul.f32.vlgmr.msrb.gmra.mxu1 %v2787_v52 }
 0x2ff   :  { %1825 = vmatmul.f32.vlgmr.msrb.gmra.mxu0 %v2787_v52 }
 0x303   :  { %1871 = vmatmul.f32.gmra.mxu1 %v2795_v41 }
 0x307   :  { %1829 = vmatmul.f32.gmra.mxu0 %v2795_v41 }
 0x30b   :  { %1875 = vmatmul.f32.gmra.mxu1 %v1602_v37 }
 0x30f   :  { %1833 = vmatmul.f32.gmra.mxu0 %v1602_v37 }
 0x313   :  { %1879 = vmatmul.f32.gmra.mxu1 %v1610_v30 }
 0x317   :  { %1837 = vmatmul.f32.gmra.mxu0 %v1610_v30 }
 0x31b   :  { %1883 = vmatmul.f32.gmra.mxu1 %v1618_v7 }
 0x31f   :  { %1841 = vmatmul.f32.gmra.mxu0 %v1618_v7 }
 0x350   :  { %v1670_v21 = vpop.f32.mrf.mxu1 }
 0x354   :  { %v1592_v31 = vpop.f32.mrf.mxu0  ;;  %v1718_v24 = vpop.f32.mrf.mxu2 }
 0x355   :  { %v1671_v48 = vadd.f32 %v1670_v21, %v1592_v31 }
 0x356   :  { %v1766_v40 = vpop.f32.mrf.mxu3 }
 0x357   :  { %v1719_v41 = vadd.f32 %v1718_v24, %v1671_v48 }
 0x358   :  { %v1674_v13 = vpop.f32.mrf.mxu1 }
 0x359   :  { %v1767_v5 = vadd.f32 %v1766_v40, %v1719_v41 }
 0x35c   :  { %v1600_v6 = vpop.f32.mrf.mxu0  ;;  %v1723_v29 = vpop.f32.mrf.mxu2 }
 0x35d   :  { %v1675_v36 = vadd.f32 %v1674_v13, %v1600_v6 }
 0x35e   :  { %v1772_v42 = vpop.f32.mrf.mxu3 }
 0x35f   :  { %v1724_v62 = vadd.f32 %v1723_v29, %v1675_v36 }
 0x360   :  { %v1678_v35 = vpop.f32.mrf.mxu1 }
 0x361   :  { %v1773_v27 = vadd.f32 %v1772_v42, %v1724_v62 }
 0x364   :  { %v1608_v16 = vpop.f32.mrf.mxu0  ;;  %v1728_v37 = vpop.f32.mrf.mxu2 }
 0x365   :  { %v1679_v59 = vadd.f32 %v1678_v35, %v1608_v16  ;;  %v1923_v35 = vsub.f32 %v1896_v9, %v2849_v58 }
 0x366   :  { %v1778_v45 = vpop.f32.mrf.mxu3 }
 0x367   :  { %v1729_v50 = vadd.f32 %v1728_v37, %v1679_v59  ;;  %v1924_v48 = vand.u32 4294901760, %v1923_v35 }
 0x368   :  { %v1682_v20 = vpop.f32.mrf.mxu1 }
 0x369   :  { %v1779_v38 = vadd.f32 %v1778_v45, %v1729_v50 }
 0x36c   :  { %v1616_v22 = vpop.f32.mrf.mxu0  ;;  %v1733_v60 = vpop.f32.mrf.mxu2 }
 0x36d   :  { %v1683_v57 = vadd.f32 %v1682_v20, %v1616_v22 }
 0x36e   :  { %v1784_v32 = vpop.f32.mrf.mxu3 }
 0x36f   :  { %v1734_v55 = vadd.f32 %v1733_v60, %v1683_v57 }
 0x370   :  { %v1686_v52 = vpop.f32.mrf.mxu1 }
 0x374   :  { %v1624_v54 = vpop.f32.mrf.mxu0  ;;  %v1738_v1 = vpop.f32.mrf.mxu2 }
 0x375   :  { %v1687_v0 = vadd.f32 %v1686_v52, %v1624_v54 }
 0x376   :  { %v1790_v15 = vpop.f32.mrf.mxu3 }
 0x377   :  { %v1739_v53 = vadd.f32 %v1738_v1, %v1687_v0 }
 0x378   :  { %v1868_v33 = vpop.f32.mrf.mxu1 }
 0x379   :  { %v1791_v12 = vadd.f32 %v1790_v15, %v1739_v53 }
 0x37c   :  { %v1826_v14 = vpop.f32.mrf.mxu0 }
 0x37d   :  { %v1827_v26 = vadd.f32 %v1826_v14, %v1767_v5  ;;  %v1925_v5 = vsub.f32 %v1923_v35, %v1924_v48 }
 0x37f   :  { %v1869_v2 = vadd.f32 %v1868_v33, %v1827_v26 }
 0x380   :  { %v1872_v23 = vpop.f32.mrf.mxu1 }
 0x381   :  { %v1889_v39 = vsel %vm2815_vm8, %v2746_v3, %v1869_v2  ;;  %v1926_v2 = vand.u32 4294901760, %v1925_v5 }
 0x382   :  { %2100 = vst.msk [vmem:[%s2873_s2] sm:$0xff] %vm2099_vm9, %v1889_v39  ;;  %v1920_v52 = vand.u32 4294901760, %v1889_v39 }
 0x384   :  { %v1830_v18 = vpop.f32.mrf.mxu0  ;;  %v1967_v61 = vsub.f32 %v1889_v39, %v1920_v52 }
 0x385   :  { %v1831_v44 = vadd.f32 %v1830_v18, %v1773_v27 }
 0x386   :  { %v1968_v62 = vand.u32 4294901760, %v1967_v61 }
 0x387   :  { %v1873_v43 = vadd.f32 %v1872_v23, %v1831_v44 }
 0x388   :  { %v1876_v3 = vpop.f32.mrf.mxu1  ;;  %v1969_v59 = vsub.f32 %v1967_v61, %v1968_v62 }
 0x389   :  { %v1890_v11 = vsel %vm2815_vm8, %v2738_v8, %v1873_v43  ;;  %v1785_v8 = vadd.f32 %v1784_v32, %v1734_v55 }
 0x38a   :  { %2101 = vst.msk [vmem:[%s2873_s2 + $0x8] sm:$0xff] %vm2099_vm9, %v1890_v11  ;;  %v1918_v16 = vand.u32 4294901760, %v1890_v11  ;;  %v1970_v18 = vand.u32 4294901760, %v1969_v59 }
 0x38c   :  { %v1834_v25 = vpop.f32.mrf.mxu0  ;;  %v1961_v29 = vsub.f32 %v1890_v11, %v1918_v16 }
 0x38d   :  { %v1835_v28 = vadd.f32 %v1834_v25, %v1779_v38 }
 0x38e   :  { %v1962_v14 = vand.u32 4294901760, %v1961_v29 }
 0x38f   :  { %v1877_v30 = vadd.f32 %v1876_v3, %v1835_v28 }
 0x390   :  { %v1880_v4 = vpop.f32.mrf.mxu1  ;;  %v1963_v37 = vsub.f32 %v1961_v29, %v1962_v14 }
 0x391   :  { %v1891_v34 = vsel %vm2815_vm8, %v2726_v56, %v1877_v30 }
 0x392   :  { %2102 = vst.msk [vmem:[%s2873_s2 + $0x10] sm:$0xff] %vm2099_vm9, %v1891_v34  ;;  %v1916_v6 = vand.u32 4294901760, %v1891_v34  ;;  %v1964_v39 = vand.u32 4294901760, %v1963_v37 }
 0x394   :  { %v1838_v46 = vpop.f32.mrf.mxu0  ;;  %v1955_v40 = vsub.f32 %v1891_v34, %v1916_v6 }
 0x395   :  { %v1839_v51 = vadd.f32 %v1838_v46, %v1785_v8 }
 0x396   :  { %v1956_v33 = vand.u32 4294901760, %v1955_v40 }
 0x397   :  { %v1881_v7 = vadd.f32 %v1880_v4, %v1839_v51 }
 0x398   :  { %v1884_v31 = vpop.f32.mrf.mxu1  ;;  %v1957_v10 = vsub.f32 %v1955_v40, %v1956_v33 }
 0x399   :  { %v1892_v56 = vsel %vm2815_vm8, %v2721_v17, %v1881_v7 }
 0x39a   :  { %2103 = vst.msk [vmem:[%s2873_s2 + $0x18] sm:$0xff] %vm2099_vm9, %v1892_v56  ;;  %v2851_v21 = vand.u32 4294901760, %v1892_v56  ;;  %v1958_v27 = vand.u32 4294901760, %v1957_v10 }
 0x39c   :  { %v1842_v47 = vpop.f32.mrf.mxu0  ;;  %v1949_v20 = vsub.f32 %v1892_v56, %v2851_v21 }
 0x39d   :  { %v1843_v63 = vadd.f32 %v1842_v47, %v1791_v12 }
 0x39e   :  { %v1950_v41 = vand.u32 4294901760, %v1949_v20 }
 0x39f   :  { %v1885_v13 = vadd.f32 %v1884_v31, %v1843_v63 }
 0x3a0   :  { %v1951_v42 = vsub.f32 %v1949_v20, %v1950_v41 }
 0x3a1   :  { %v1893_v17 = vsel %vm2815_vm8, %v2751_v19, %v1885_v13 }
 0x3a2   :  { %v1899_v22 = vsel %vm219_vm0, %v1893_v17, 0  ;;  %2105 = vst.msk [vmem:[%s2873_s2 + $0x20] sm:$0x3] %vm2104_vm10, %v1893_v17  ;;  %v1952_v23 = vand.u32 4294901760, %v1951_v42 }
 0x3a3   :  { %v1912_v24 = vand.u32 4294901760, %v1899_v22 }
 0x3a5   :  { %1913 = vmatpush.msrb.mxu2 %v1912_v24  ;;  %v1943_v54 = vsub.f32 %v1899_v22, %v1912_v24 }
 0x3a7   :  { %1915 = vmatpush.msrb.mxu2 %v2851_v21  ;;  %v1944_v19 = vand.u32 4294901760, %v1943_v54 }
 0x3a9   :  { %1917 = vmatpush.msrb.mxu2 %v1916_v6  ;;  %v1945_v36 = vsub.f32 %v1943_v54, %v1944_v19 }
 0x3ab   :  { %1919 = vmatpush.msrb.mxu2 %v1918_v16  ;;  %v1946_v26 = vand.u32 4294901760, %v1945_v36 }
 0x3ad   :  { %1921 = vmatpush.msrb.mxu2 %v1920_v52  ;;  %1947 = vmatpush.msrb.mxu3 %v1946_v26 }
 0x3ae   :  { %1927 = vmatmul.f32.vlgmr.msrb.gmra.mxu2 %v1926_v2 }
 0x3af   :  { %1990 = vmatpush.msra.mxu2 %v1943_v54  ;;  %1953 = vmatpush.msrb.mxu3 %v1952_v23 }
 0x3b1   :  { %1993 = vmatpush.msra.mxu2 %v1949_v20  ;;  %1959 = vmatpush.msrb.mxu3 %v1958_v27 }
 0x3b3   :  { %1996 = vmatpush.msra.mxu2 %v1955_v40  ;;  %1965 = vmatpush.msrb.mxu3 %v1964_v39 }
 0x3b5   :  { %1999 = vmatpush.msra.mxu2 %v1961_v29  ;;  %1971 = vmatpush.msrb.mxu3 %v1970_v18 }
 0x3b6   :  { %1973 = vmatmul.f32.vlgmr.msrb.gmra.mxu3 %v2849_v58 }
 0x3b7   :  { %2002 = vmatpush.msra.mxu2 %v1967_v61  ;;  %2021 = vmatpush.msra.mxu3 %v1912_v24 }
 0x3b8   :  { %2005 = vmatmul.f32.vlgmr.msra.gmra.mxu2 %v1923_v35 }
 0x3b9   :  { %2051 = vmatpush.msrb.mxu2 %v1944_v19  ;;  %2023 = vmatpush.msra.mxu3 %v2851_v21 }
 0x3bb   :  { %2055 = vmatpush.msrb.mxu2 %v1950_v41  ;;  %2025 = vmatpush.msra.mxu3 %v1916_v6 }
 0x3bd   :  { %2059 = vmatpush.msrb.mxu2 %v1956_v33  ;;  %2027 = vmatpush.msra.mxu3 %v1918_v16 }
 0x3bf   :  { %2063 = vmatpush.msrb.mxu2 %v1962_v14  ;;  %2029 = vmatpush.msra.mxu3 %v1920_v52 }
 0x3c0   :  { %2033 = vmatmul.f32.vlgmr.msra.gmra.mxu3 %v1924_v48 }
 0x3c1   :  { %2067 = vmatpush.msrb.mxu2 %v1968_v62  ;;  %2085 = vmatpush.msrb.mxu3 %v1912_v24 }
 0x3c2   :  { %2069 = vmatmul.f32.vlgmr.msrb.gmra.mxu2 %v2849_v58 }
 0x3c3   :  { %2087 = vmatpush.msrb.mxu3 %v2851_v21 }
 0x3c5   :  { %2089 = vmatpush.msrb.mxu3 %v1916_v6 }
 0x3c7   :  { %2091 = vmatpush.msrb.mxu3 %v1918_v16 }
 0x3c9   :  { %2093 = vmatpush.msrb.mxu3 %v1920_v52 }
 0x3ca   :  { %2095 = vmatmul.f32.vlgmr.msrb.gmra.mxu3 %v2849_v58 }
 0x431   :  { %v1928_v44 = vpop.f32.mrf.mxu2 }
 0x439   :  { %v1974_v45 = vpop.f32.mrf.mxu3 }
 0x43a   :  { %v1975_v43 = vadd.f32 %v1974_v45, %v1928_v44 }
 0x43b   :  { %v2006_v50 = vpop.f32.mrf.mxu2 }
 0x43c   :  { %v2007_v3 = vadd.f32 %v2006_v50, %v1975_v43 }
 0x443   :  { %v2034_v11 = vpop.f32.mrf.mxu3 }
 0x444   :  { %v2035_v38 = vadd.f32 %v2034_v11, %v2007_v3 }
 0x445   :  { %v2070_v57 = vpop.f32.mrf.mxu2 }
 0x446   :  { %v2071_v60 = vadd.f32 %v2070_v57, %v2035_v38 }
 0x44d   :  { %v2096_v25 = vpop.f32.mrf.mxu3 }
 0x44e   :  { %v2097_v28 = vadd.f32 %v2096_v25, %v2071_v60 }
 0x450   :  { %2107 = vst.msk [vmem:[%s2873_s2 + $0x22] sm:$0x1] %vm2106_vm11, %v2097_v28 }

</bundles_post_ra>
